<compile_context>
chip_gen: v5e
topology: v5e:2x2
jax: 0.10.0
libtpu: 0.0.40
codegen_flags: <defaults>
</compile_context>

<pallas_src>
import functools
import math

import jax
import jax.numpy as jnp
from jax.experimental import pallas as pl
from jax.experimental.pallas import tpu as pltpu

MXU_DTYPE = jnp.bfloat16   # MXU input dtype; accumulation stays f32.
ACT_DTYPE = jnp.bfloat16   # inter-kernel activation dtype (qkv / q / kv / attn out).
LN_EPS = 1e-5              # torch.nn.LayerNorm default.
ROW_TILE = 512             # token-row tile for the [N, D] kernels.
COL_TILE = 512             # output-column tile for plain linears.
FF_TILE = 512              # d_ff chunk for the expert weights.


@functools.lru_cache(maxsize=None)
def _vmem_limit_bytes():
    # Generation-aware VMEM cap: ~3/4 of physical capacity (48 MiB on v7x,
    # 96 MiB on v5e/v6e); conservative 64 MiB if the query is unavailable.
    try:
        cap = int(pltpu.get_tpu_info().vmem_capacity_bytes)
        return min(max((cap * 3) // 4, 32 * 1024 * 1024), 100 * 1024 * 1024)
    except Exception:
        return 64 * 1024 * 1024


def _cparams(dim_sem):
    return pltpu.CompilerParams(dimension_semantics=dim_sem,
                                vmem_limit_bytes=_vmem_limit_bytes())


# ----------------------------------------------------------------------------
# Plain linear (fused QKV / KV / Q projections) -- row + column tiled
# ----------------------------------------------------------------------------

def _linear_kernel(x_ref, w_ref, b_ref, o_ref):
    x = x_ref[...].astype(MXU_DTYPE)
    acc = jnp.dot(x, w_ref[...], preferred_element_type=jnp.float32) + b_ref[...]
    o_ref[...] = acc.astype(o_ref.dtype)


def linear(x, w, b, *, tm=ROW_TILE, tn=COL_TILE, out_dtype=ACT_DTYPE):
    N, Din = x.shape
    Dout = w.shape[1]
    tm = min(tm, N)
    tn = min(tn, Dout)
    return pl.pallas_call(
        _linear_kernel,
        out_shape=jax.ShapeDtypeStruct((N, Dout), out_dtype),
        grid=(pl.cdiv(N, tm), pl.cdiv(Dout, tn)),
        in_specs=[pl.BlockSpec((tm, Din), lambda i, j: (i, 0)),
                  pl.BlockSpec((Din, tn), lambda i, j: (0, j)),   # bf16 weight tile
                  pl.BlockSpec((1, tn), lambda i, j: (0, j))],
        out_specs=pl.BlockSpec((tm, tn), lambda i, j: (i, j)),
        compiler_params=_cparams(("parallel", "parallel")),
    )(x, w.astype(MXU_DTYPE), b.reshape(1, Dout))


# ----------------------------------------------------------------------------
# Fused: output projection + residual add + LayerNorm   (norm1 / norm2)
# ----------------------------------------------------------------------------

def _linear_add_ln_kernel(y_ref, w_ref, b_ref, r_ref, g_ref, be_ref, o_ref, *, eps):
    y = y_ref[...].astype(MXU_DTYPE)
    proj = jnp.dot(y, w_ref[...], preferred_element_type=jnp.float32) + b_ref[...]
    z = r_ref[...] + proj                                    # residual (f32)
    mu = jnp.mean(z, axis=-1, keepdims=True)
    var = jnp.mean(jnp.square(z - mu), axis=-1, keepdims=True)
    o_ref[...] = (z - mu) * jax.lax.rsqrt(var + eps) * g_ref[...] + be_ref[...]


def linear_add_layernorm(y, w, b, residual, gamma, beta, *, tm=ROW_TILE, eps=LN_EPS):
    # LayerNorm needs the full row, so Dout (= d_model) stays resident here.
    N, Din = y.shape
    Dout = w.shape[1]
    tm = min(tm, N)
    kern = functools.partial(_linear_add_ln_kernel, eps=eps)
    return pl.pallas_call(
        kern,
        out_shape=jax.ShapeDtypeStruct((N, Dout), jnp.float32),
        grid=(pl.cdiv(N, tm),),
        in_specs=[pl.BlockSpec((tm, Din), lambda i: (i, 0)),
                  pl.BlockSpec((Din, Dout), lambda i: (0, 0)),    # bf16 weight
                  pl.BlockSpec((1, Dout), lambda i: (0, 0)),
                  pl.BlockSpec((tm, Dout), lambda i: (i, 0)),
                  pl.BlockSpec((1, Dout), lambda i: (0, 0)),
                  pl.BlockSpec((1, Dout), lambda i: (0, 0))],
        out_specs=pl.BlockSpec((tm, Dout), lambda i: (i, 0)),
        compiler_params=_cparams(("parallel",)),
    )(y, w.astype(MXU_DTYPE), b.reshape(1, Dout), residual,
      gamma.reshape(1, Dout), beta.reshape(1, Dout))


# ----------------------------------------------------------------------------
# Multi-head attention (grid over batch; heads handled inside the kernel)
# ----------------------------------------------------------------------------

def _mha_heads(q_all, k_all, v_all, m, o_ref, *, nheads, scale):
    # q_all [Sq, D], k_all/v_all [Sk, D] (bf16), m [Sq, Sk] (int8); writes o_ref[0].
    D = q_all.shape[-1]
    dk = D // nheads
    keep = m != 0
    for h in range(nheads):
        sl = slice(h * dk, (h + 1) * dk)
        # NT-form matmul (contract last dims): no in-kernel transpose of K.
        s = jax.lax.dot_general(q_all[:, sl], k_all[:, sl],
                                (((1,), (1,)), ((), ())),
                                preferred_element_type=jnp.float32)
        s = s * scale
        s = jnp.where(keep, s, jnp.float32(-1e30))           # ~masked_fill(-inf)
        s = s - jnp.max(s, axis=-1, keepdims=True)
        p = jnp.exp(s)
        p = p / jnp.sum(p, axis=-1, keepdims=True)            # exact divide (parity)
        o_h = jnp.dot(p.astype(MXU_DTYPE), v_all[:, sl],
                      preferred_element_type=jnp.float32)
        o_ref[0, :, sl] = o_h.astype(o_ref.dtype)              # per-head store, no concat


def _self_attn_kernel(qkv_ref, m_ref, o_ref, *, nheads, d_model, scale):
    D = d_model
    qkv = qkv_ref[0]                                          # [S, 3D] bf16
    _mha_heads(qkv[:, :D], qkv[:, D:2 * D], qkv[:, 2 * D:],
               m_ref[0], o_ref, nheads=nheads, scale=scale)


def _cross_attn_kernel(q_ref, kv_ref, m_ref, o_ref, *, nheads, d_model, scale):
    D = d_model
    kv = kv_ref[0]                                            # [Sk, 2D] bf16
    _mha_heads(q_ref[0], kv[:, :D], kv[:, D:],
               m_ref[0], o_ref, nheads=nheads, scale=scale)


def self_attention(qkv, mask, *, nheads, d_model, scale):
    B, S, C3 = qkv.shape
    kern = functools.partial(_self_attn_kernel, nheads=nheads,
                             d_model=d_model, scale=scale)
    return pl.pallas_call(
        kern,
        out_shape=jax.ShapeDtypeStruct((B, S, d_model), ACT_DTYPE),
        grid=(B,),
        in_specs=[pl.BlockSpec((1, S, C3), lambda b: (b, 0, 0)),
                  pl.BlockSpec((1, S, S), lambda b: (b, 0, 0))],   # int8 mask
        out_specs=pl.BlockSpec((1, S, d_model), lambda b: (b, 0, 0)),
        compiler_params=_cparams(("parallel",)),
    )(qkv, mask)


def cross_attention(q, kv, mask, *, nheads, d_model, scale):
    B, Sq, D = q.shape
    Sk, C2 = kv.shape[1], kv.shape[2]
    kern = functools.partial(_cross_attn_kernel, nheads=nheads,
                             d_model=d_model, scale=scale)
    return pl.pallas_call(
        kern,
        out_shape=jax.ShapeDtypeStruct((B, Sq, d_model), ACT_DTYPE),
        grid=(B,),
        in_specs=[pl.BlockSpec((1, Sq, D), lambda b: (b, 0, 0)),
                  pl.BlockSpec((1, Sk, C2), lambda b: (b, 0, 0)),
                  pl.BlockSpec((1, Sq, Sk), lambda b: (b, 0, 0))],  # int8 mask
        out_specs=pl.BlockSpec((1, Sq, d_model), lambda b: (b, 0, 0)),
        compiler_params=_cparams(("parallel",)),
    )(q, kv, mask)


# ----------------------------------------------------------------------------
# Fused router: switch matmul + softmax + argmax + route_prob_max
# ----------------------------------------------------------------------------

def _router_kernel(x_ref, w_ref, b_ref, prob_ref, routes_ref, rmax_ref):
    x = x_ref[...].astype(MXU_DTYPE)
    logits = jnp.dot(x, w_ref[...], preferred_element_type=jnp.float32) + b_ref[...]
    m = jnp.max(logits, axis=-1, keepdims=True)
    e = jnp.exp(logits - m)
    prob = e / jnp.sum(e, axis=-1, keepdims=True)
    rmax = jnp.max(prob, axis=-1, keepdims=True)
    E = prob.shape[-1]
    idx = jax.lax.broadcasted_iota(jnp.int32, prob.shape, 1)
    routes = jnp.min(jnp.where(prob >= rmax, idx, E), axis=-1, keepdims=True)
    prob_ref[...] = prob
    routes_ref[...] = routes
    rmax_ref[...] = rmax


def router(x, w, b, *, tm=ROW_TILE):
    N, D = x.shape
    E = w.shape[1]
    tm = min(tm, N)
    return pl.pallas_call(
        _router_kernel,
        out_shape=(jax.ShapeDtypeStruct((N, E), jnp.float32),
                   jax.ShapeDtypeStruct((N, 1), jnp.int32),
                   jax.ShapeDtypeStruct((N, 1), jnp.float32)),
        grid=(pl.cdiv(N, tm),),
        in_specs=[pl.BlockSpec((tm, D), lambda i: (i, 0)),
                  pl.BlockSpec((D, E), lambda i: (0, 0)),
                  pl.BlockSpec((1, E), lambda i: (0, 0))],
        out_specs=(pl.BlockSpec((tm, E), lambda i: (i, 0)),
                   pl.BlockSpec((tm, 1), lambda i: (i, 0)),
                   pl.BlockSpec((tm, 1), lambda i: (i, 0))),
        compiler_params=_cparams(("parallel",)),
    )(x, w.astype(MXU_DTYPE), b.reshape(1, E))


# ----------------------------------------------------------------------------
# Switch (MoE) FFN with F-chunked expert weights + fused residual + LayerNorm
# ----------------------------------------------------------------------------

def _moe_ffn_ln_kernel(x_ref, w1_ref, b1_ref, w2_ref, b2_ref,
                       routes_ref, gmax_ref, g_ref, be_ref,
                       o_ref, acc_ref, *, eps):
    # grid = (row_tiles [parallel], experts [arbitrary], F-chunks [arbitrary]).
    e = pl.program_id(1)
    f = pl.program_id(2)
    n_e = pl.num_programs(1)
    n_f = pl.num_programs(2)

    @pl.when(jnp.logical_and(e == 0, f == 0))
    def _():
        acc_ref[...] = jnp.zeros_like(acc_ref)

    # Per-token gate: route_prob_max where routed to this expert, else 0.
    gate = jnp.where(routes_ref[...] == e, gmax_ref[...], 0.0)       # [tm, 1] f32

    x = x_ref[...].astype(MXU_DTYPE)
    h = jnp.dot(x, w1_ref[0], preferred_element_type=jnp.float32) + b1_ref[0]
    h = jnp.maximum(h, 0.0)                                          # ReLU
    y = jnp.dot(h.astype(MXU_DTYPE), w2_ref[0],
                preferred_element_type=jnp.float32)

    @pl.when(f == 0)
    def _():
        acc_ref[...] += gate * b2_ref[0]                             # b2 once/expert
    acc_ref[...] += gate * y

    @pl.when(jnp.logical_and(e == n_e - 1, f == n_f - 1))
    def _():
        z = x_ref[...] + acc_ref[...]                                # residual
        mu = jnp.mean(z, axis=-1, keepdims=True)
        var = jnp.mean(jnp.square(z - mu), axis=-1, keepdims=True)
        o_ref[...] = (z - mu) * jax.lax.rsqrt(var + eps) * g_ref[...] + be_ref[...]


def moe_ffn_layernorm(x, w1, b1, w2, b2, routes, route_prob_max, gamma, beta,
                      *, tm=ROW_TILE, tf=FF_TILE, eps=LN_EPS):
    N, D = x.shape
    E, _, F = w1.shape
    tm = min(tm, N)
    tf = min(tf, F)
    kern = functools.partial(_moe_ffn_ln_kernel, eps=eps)
    return pl.pallas_call(
        kern,
        out_shape=jax.ShapeDtypeStruct((N, D), jnp.float32),
        grid=(pl.cdiv(N, tm), E, pl.cdiv(F, tf)),
        in_specs=[pl.BlockSpec((tm, D), lambda t, e, f: (t, 0)),
                  pl.BlockSpec((1, D, tf), lambda t, e, f: (e, 0, f)),  # bf16 w1 chunk
                  pl.BlockSpec((1, 1, tf), lambda t, e, f: (e, 0, f)),
                  pl.BlockSpec((1, tf, D), lambda t, e, f: (e, f, 0)),  # bf16 w2 chunk
                  pl.BlockSpec((1, 1, D), lambda t, e, f: (e, 0, 0)),
                  pl.BlockSpec((tm, 1), lambda t, e, f: (t, 0)),     # routes (int32)
                  pl.BlockSpec((tm, 1), lambda t, e, f: (t, 0)),     # route_prob_max
                  pl.BlockSpec((1, D), lambda t, e, f: (0, 0)),      # ln3 gamma
                  pl.BlockSpec((1, D), lambda t, e, f: (0, 0))],     # ln3 beta
        out_specs=pl.BlockSpec((tm, D), lambda t, e, f: (t, 0)),
        scratch_shapes=[pltpu.VMEM((tm, D), jnp.float32)],
        compiler_params=_cparams(("parallel", "arbitrary", "arbitrary")),
    )(x, w1.astype(MXU_DTYPE), b1, w2.astype(MXU_DTYPE), b2,
      routes, route_prob_max, gamma.reshape(1, D), beta.reshape(1, D))


# ----------------------------------------------------------------------------
# Module glue (parameter setup, batch-major layout, routing bookkeeping)
# ----------------------------------------------------------------------------

def init_params(key, d_model, n_experts, d_ff):
    keys = jax.random.split(key, 24)
    it = iter(keys)

    def w(shape, dtype=jnp.float32):
        return (0.02 * jax.random.normal(next(it), shape, jnp.float32)).astype(dtype)

    D, BF = d_model, jnp.bfloat16
    return dict(
        self_attn=dict(w_qkv=w((D, 3 * D), BF), b_qkv=w((3 * D,)),
                       wo=w((D, D), BF), bo=w((D,))),
        cross_attn=dict(wq=w((D, D), BF), bq=w((D,)),
                        w_kv=w((D, 2 * D), BF), b_kv=w((2 * D,)),
                        wo=w((D, D), BF), bo=w((D,))),
        ln1_g=jnp.ones((D,), jnp.float32), ln1_b=jnp.zeros((D,), jnp.float32),
        ln2_g=jnp.ones((D,), jnp.float32), ln2_b=jnp.zeros((D,), jnp.float32),
        ln3_g=jnp.ones((D,), jnp.float32), ln3_b=jnp.zeros((D,), jnp.float32),
        switch_w=w((D, n_experts), BF), switch_b=w((n_experts,)),
        exp_w1=w((n_experts, D, d_ff), BF), exp_b1=w((n_experts, 1, d_ff)),
        exp_w2=w((n_experts, d_ff, D), BF), exp_b2=w((n_experts, 1, D)),
    )


def switch_decoder_layer(params, dec, dec_mask, enc, enc_mask, *, nheads):
    S, B, D = dec.shape
    Se = enc.shape[0]
    N = B * S
    scale = 1.0 / math.sqrt(D // nheads)

    # --- single entry transposes: batch-major activations, int8 masks ---
    x = jnp.transpose(dec, (1, 0, 2)).reshape(N, D)                  # [B*S, D] f32
    enc_x = jnp.transpose(enc, (1, 0, 2)).reshape(B * Se, D)
    m_self = jnp.transpose(dec_mask, (2, 0, 1)).astype(jnp.int8)     # [B, S, S]
    m_cross = jnp.transpose(enc_mask, (2, 0, 1)).astype(jnp.int8)    # [B, S, Se]

    # --- self attention (fused QKV) + residual + LayerNorm (fused) ---
    sp = params['self_attn']
    qkv = linear(x, sp['w_qkv'], sp['b_qkv'])                        # [N, 3D] bf16
    attn = self_attention(qkv.reshape(B, S, 3 * D), m_self,
                          nheads=nheads, d_model=D, scale=scale)     # [B,S,D] bf16
    x = linear_add_layernorm(attn.reshape(N, D), sp['wo'], sp['bo'], x,
                             params['ln1_g'], params['ln1_b'])

    # --- cross attention (fused KV) + residual + LayerNorm (fused) ---
    cp = params['cross_attn']
    q = linear(x, cp['wq'], cp['bq'])                                # [N, D] bf16
    kv = linear(enc_x, cp['w_kv'], cp['b_kv'])                       # [B*Se, 2D] bf16
    attn = cross_attention(q.reshape(B, S, D), kv.reshape(B, Se, 2 * D), m_cross,
                           nheads=nheads, d_model=D, scale=scale)
    x = linear_add_layernorm(attn.reshape(N, D), cp['wo'], cp['bo'], x,
                             params['ln2_g'], params['ln2_b'])

    # --- fused router + Switch (MoE) feed-forward + residual + LayerNorm ---
    E = params['switch_w'].shape[1]
    route_prob, routes, route_prob_max = router(x, params['switch_w'],
                                                params['switch_b'])
    counts = jnp.sum(jax.nn.one_hot(routes[:, 0], E, dtype=jnp.float32), axis=0)
    route_prob_sum = jnp.sum(route_prob, axis=0)

    x = moe_ffn_layernorm(x, params['exp_w1'], params['exp_b1'],
                          params['exp_w2'], params['exp_b2'],
                          routes, route_prob_max,
                          params['ln3_g'], params['ln3_b'])

    # --- single exit transpose back to [seq, batch, d_model] ---
    dec_out = jnp.transpose(x.reshape(B, S, D), (1, 0, 2))
    # route_prob_max in the original (seq-major flatten) token order.
    rpm = jnp.transpose(route_prob_max[:, 0].reshape(B, S), (1, 0)).reshape(S * B)
    n_dropped = 0                                                    # drop_tokens=False
    return dec_out, counts, route_prob_sum, n_dropped, rpm


# ----------------------------------------------------------------------------
# Demo
# ----------------------------------------------------------------------------

if __name__ == "__main__":
    d_model, nheads, n_experts, d_ff = 32, 4, 4, 64
    S_dec, S_enc, B = 8, 10, 2

    key = jax.random.PRNGKey(0)
    kp, kd, ke = jax.random.split(key, 3)
    params = init_params(kp, d_model, n_experts, d_ff)

    dec = jax.random.normal(kd, (S_dec, B, d_model), jnp.float32)
    enc = jax.random.normal(ke, (S_enc, B, d_model), jnp.float32)
    # masks: [seq_q, seq_k, batch]; nonzero = attend
    dec_mask = jnp.broadcast_to(
        jnp.tril(jnp.ones((S_dec, S_dec), jnp.float32))[:, :, None],
        (S_dec, S_dec, B))
    enc_mask = jnp.ones((S_dec, S_enc, B), jnp.float32)

    layer = jax.jit(functools.partial(switch_decoder_layer, nheads=nheads))
    out, counts, route_prob_sum, n_dropped, route_prob_max = layer(
        params, dec, dec_mask, enc, enc_mask)

    jax.block_until_ready((out, counts, route_prob_sum, route_prob_max))
    assert out.shape == (S_dec, B, d_model)
    assert counts.shape == (n_experts,)
    assert route_prob_sum.shape == (n_experts,)
    assert route_prob_max.shape == (S_dec * B,)
    assert n_dropped == 0
    print("KERNEL_OK")
</pallas_src>

<mosaic_0001>
module attributes {stable_mosaic.version = 11 : i64} {
  func.func @_linear_kernel(%arg0: i32, %arg1: i32, %arg2: memref<16x32xf32, #tpu.memory_space<vmem>>, %arg3: memref<32x96xbf16, #tpu.memory_space<vmem>>, %arg4: memref<1x96xf32, #tpu.memory_space<vmem>>, %arg5: memref<16x96xbf16, #tpu.memory_space<vmem>>) attributes {dimension_semantics = [#tpu.dimension_semantics<parallel>, #tpu.dimension_semantics<parallel>], iteration_bounds = array<i64: 1, 1>, scalar_prefetch = 0 : i64, scratch_operands = 0 : i64, tpu.core_type = #tpu.core_type<tc>, window_params = [{transform_indices = @transform_0, window_bounds = array<i64: 16, 32>}, {transform_indices = @transform_1, window_bounds = array<i64: 32, 96>}, {transform_indices = @transform_2, window_bounds = array<i64: 1, 96>}, {transform_indices = @transform_3, window_bounds = array<i64: 16, 96>}]} {
    %c0 = arith.constant 0 : index
    %c0_0 = arith.constant 0 : index
    %0 = vector.load %arg2[%c0, %c0_0] : memref<16x32xf32, #tpu.memory_space<vmem>>, vector<16x32xf32>
    %1 = arith.truncf %0 : vector<16x32xf32> to vector<16x32xbf16>
    %c0_1 = arith.constant 0 : index
    %c0_2 = arith.constant 0 : index
    %2 = vector.load %arg3[%c0_1, %c0_2] : memref<32x96xbf16, #tpu.memory_space<vmem>>, vector<32x96xbf16>
    %cst = arith.constant dense<0.000000e+00> : vector<16x96xf32>
    %3 = tpu.matmul %1, %2, %cst {dimension_numbers = #tpu.dot_dimension_numbers<[1], [0], [0], [1], [0, 0, 1, 1], [], []>} : vector<16x32xbf16>, vector<32x96xbf16>, vector<16x96xf32> -> vector<16x96xf32>
    %c0_3 = arith.constant 0 : index
    %c0_4 = arith.constant 0 : index
    %4 = vector.load %arg4[%c0_3, %c0_4] : memref<1x96xf32, #tpu.memory_space<vmem>>, vector<1x96xf32>
    %5 = vector.broadcast %4 : vector<1x96xf32> to vector<16x96xf32>
    %6 = arith.addf %3, %5 : vector<16x96xf32>
    %7 = arith.truncf %6 : vector<16x96xf32> to vector<16x96xbf16>
    %c0_5 = arith.constant 0 : index
    %c0_6 = arith.constant 0 : index
    %8 = vector.load %arg5[%c0_5, %c0_6] : memref<16x96xbf16, #tpu.memory_space<vmem>>, vector<16x96xbf16>
    tpu.vector_store %arg5[%c0_5, %c0_6], %7 {strides = array<i32>} : memref<16x96xbf16, #tpu.memory_space<vmem>>, vector<16x96xbf16>,
    return
  }
  func.func @transform_0(%arg0: i32, %arg1: i32) -> (i32, i32) {
    %c0_i32 = arith.constant 0 : i32
    %c0_i32_0 = arith.constant 0 : i32
    return %arg0, %c0_i32 : i32, i32
  }
  func.func @transform_1(%arg0: i32, %arg1: i32) -> (i32, i32) {
    %c0_i32 = arith.constant 0 : i32
    %c0_i32_0 = arith.constant 0 : i32
    return %c0_i32, %arg1 : i32, i32
  }
  func.func @transform_2(%arg0: i32, %arg1: i32) -> (i32, i32) {
    %c0_i32 = arith.constant 0 : i32
    %c0_i32_0 = arith.constant 0 : i32
    return %c0_i32, %arg1 : i32, i32
  }
  func.func @transform_3(%arg0: i32, %arg1: i32) -> (i32, i32) {
    %c0_i32 = arith.constant 0 : i32
    return %arg0, %arg1 : i32, i32
  }
}

module attributes {stable_mosaic.version = 11 : i64} {
  func.func @_linear_add_ln_kernel(%arg0: i32, %arg1: memref<16x32xbf16, #tpu.memory_space<vmem>>, %arg2: memref<32x32xbf16, #tpu.memory_space<vmem>>, %arg3: memref<1x32xf32, #tpu.memory_space<vmem>>, %arg4: memref<16x32xf32, #tpu.memory_space<vmem>>, %arg5: memref<1x32xf32, #tpu.memory_space<vmem>>, %arg6: memref<1x32xf32, #tpu.memory_space<vmem>>, %arg7: memref<16x32xf32, #tpu.memory_space<vmem>>) attributes {dimension_semantics = [#tpu.dimension_semantics<parallel>], iteration_bounds = array<i64: 1>, scalar_prefetch = 0 : i64, scratch_operands = 0 : i64, tpu.core_type = #tpu.core_type<tc>, window_params = [{transform_indices = @transform_0, window_bounds = array<i64: 16, 32>}, {pipeline_mode = #tpu.pipeline_mode<synchronous>, transform_indices = @transform_1, window_bounds = array<i64: 32, 32>}, {pipeline_mode = #tpu.pipeline_mode<synchronous>, transform_indices = @transform_2, window_bounds = array<i64: 1, 32>}, {transform_indices = @transform_3, window_bounds = array<i64: 16, 32>}, {pipeline_mode = #tpu.pipeline_mode<synchronous>, transform_indices = @transform_4, window_bounds = array<i64: 1, 32>}, {pipeline_mode = #tpu.pipeline_mode<synchronous>, transform_indices = @transform_5, window_bounds = array<i64: 1, 32>}, {transform_indices = @transform_6, window_bounds = array<i64: 16, 32>}]} {
    %c0 = arith.constant 0 : index
    %c0_0 = arith.constant 0 : index
    %0 = vector.load %arg1[%c0, %c0_0] : memref<16x32xbf16, #tpu.memory_space<vmem>>, vector<16x32xbf16>
    %c0_1 = arith.constant 0 : index
    %c0_2 = arith.constant 0 : index
    %1 = vector.load %arg2[%c0_1, %c0_2] : memref<32x32xbf16, #tpu.memory_space<vmem>>, vector<32x32xbf16>
    %cst = arith.constant dense<0.000000e+00> : vector<16x32xf32>
    %2 = tpu.matmul %0, %1, %cst {dimension_numbers = #tpu.dot_dimension_numbers<[1], [0], [0], [1], [0, 0, 1, 1], [], []>} : vector<16x32xbf16>, vector<32x32xbf16>, vector<16x32xf32> -> vector<16x32xf32>
    %c0_3 = arith.constant 0 : index
    %c0_4 = arith.constant 0 : index
    %3 = vector.load %arg3[%c0_3, %c0_4] : memref<1x32xf32, #tpu.memory_space<vmem>>, vector<1x32xf32>
    %4 = vector.broadcast %3 : vector<1x32xf32> to vector<16x32xf32>
    %5 = arith.addf %2, %4 : vector<16x32xf32>
    %c0_5 = arith.constant 0 : index
    %c0_6 = arith.constant 0 : index
    %6 = vector.load %arg4[%c0_5, %c0_6] : memref<16x32xf32, #tpu.memory_space<vmem>>, vector<16x32xf32>
    %7 = arith.addf %6, %5 : vector<16x32xf32>
    %cst_7 = arith.constant dense<0.000000e+00> : vector<16xf32>
    %8 = vector.multi_reduction <add>, %7, %cst_7 [1] : vector<16x32xf32> to vector<16xf32>
    %9 = vector.shape_cast %8 : vector<16xf32> to vector<16x1xf32>
    %cst_8 = arith.constant 3.200000e+01 : f32
    %10 = vector.broadcast %cst_8 : f32 to vector<16x1xf32>
    %11 = arith.divf %9, %10 : vector<16x1xf32>
    %12 = vector.broadcast %11 : vector<16x1xf32> to vector<16x32xf32>
    %13 = arith.subf %7, %12 : vector<16x32xf32>
    %14 = arith.mulf %13, %13 : vector<16x32xf32>
    %cst_9 = arith.constant dense<0.000000e+00> : vector<16xf32>
    %15 = vector.multi_reduction <add>, %14, %cst_9 [1] : vector<16x32xf32> to vector<16xf32>
    %16 = vector.shape_cast %15 : vector<16xf32> to vector<16x1xf32>
    %cst_10 = arith.constant 3.200000e+01 : f32
    %17 = vector.broadcast %cst_10 : f32 to vector<16x1xf32>
    %18 = arith.divf %16, %17 : vector<16x1xf32>
    %19 = vector.broadcast %11 : vector<16x1xf32> to vector<16x32xf32>
    %20 = arith.subf %7, %19 : vector<16x32xf32>
    %cst_11 = arith.constant 9.99999974E-6 : f32
    %21 = vector.broadcast %cst_11 : f32 to vector<16x1xf32>
    %22 = arith.addf %18, %21 : vector<16x1xf32>
    %23 = math.rsqrt %22 : vector<16x1xf32>
    %24 = vector.broadcast %23 : vector<16x1xf32> to vector<16x32xf32>
    %25 = arith.mulf %20, %24 : vector<16x32xf32>
    %c0_12 = arith.constant 0 : index
    %c0_13 = arith.constant 0 : index
    %26 = vector.load %arg5[%c0_12, %c0_13] : memref<1x32xf32, #tpu.memory_space<vmem>>, vector<1x32xf32>
    %27 = vector.broadcast %26 : vector<1x32xf32> to vector<16x32xf32>
    %28 = arith.mulf %25, %27 : vector<16x32xf32>
    %c0_14 = arith.constant 0 : index
    %c0_15 = arith.constant 0 : index
    %29 = vector.load %arg6[%c0_14, %c0_15] : memref<1x32xf32, #tpu.memory_space<vmem>>, vector<1x32xf32>
    %30 = vector.broadcast %29 : vector<1x32xf32> to vector<16x32xf32>
    %31 = arith.addf %28, %30 : vector<16x32xf32>
    %c0_16 = arith.constant 0 : index
    %c0_17 = arith.constant 0 : index
    %32 = vector.load %arg7[%c0_16, %c0_17] : memref<16x32xf32, #tpu.memory_space<vmem>>, vector<16x32xf32>
    tpu.vector_store %arg7[%c0_16, %c0_17], %31 {strides = array<i32>} : memref<16x32xf32, #tpu.memory_space<vmem>>, vector<16x32xf32>,
    return
  }
  func.func @transform_0(%arg0: i32) -> (i32, i32) {
    %c0_i32 = arith.constant 0 : i32
    %c0_i32_0 = arith.constant 0 : i32
    return %arg0, %c0_i32 : i32, i32
  }
  func.func @transform_1(%arg0: i32) -> (i32, i32) {
    %c0_i32 = arith.constant 0 : i32
    %c0_i32_0 = arith.constant 0 : i32
    %c0_i32_1 = arith.constant 0 : i32
    return %c0_i32, %c0_i32_0 : i32, i32
  }
  func.func @transform_2(%arg0: i32) -> (i32, i32) {
    %c0_i32 = arith.constant 0 : i32
    %c0_i32_0 = arith.constant 0 : i32
    %c0_i32_1 = arith.constant 0 : i32
    return %c0_i32, %c0_i32_0 : i32, i32
  }
  func.func @transform_3(%arg0: i32) -> (i32, i32) {
    %c0_i32 = arith.constant 0 : i32
    %c0_i32_0 = arith.constant 0 : i32
    return %arg0, %c0_i32 : i32, i32
  }
  func.func @transform_4(%arg0: i32) -> (i32, i32) {
    %c0_i32 = arith.constant 0 : i32
    %c0_i32_0 = arith.constant 0 : i32
    %c0_i32_1 = arith.constant 0 : i32
    return %c0_i32, %c0_i32_0 : i32, i32
  }
  func.func @transform_5(%arg0: i32) -> (i32, i32) {
    %c0_i32 = arith.constant 0 : i32
    %c0_i32_0 = arith.constant 0 : i32
    %c0_i32_1 = arith.constant 0 : i32
    return %c0_i32, %c0_i32_0 : i32, i32
  }
  func.func @transform_6(%arg0: i32) -> (i32, i32) {
    %c0_i32 = arith.constant 0 : i32
    %c0_i32_0 = arith.constant 0 : i32
    return %arg0, %c0_i32 : i32, i32
  }
}

module attributes {stable_mosaic.version = 11 : i64} {
  func.func @_linear_kernel(%arg0: i32, %arg1: i32, %arg2: memref<16x32xf32, #tpu.memory_space<vmem>>, %arg3: memref<32x32xbf16, #tpu.memory_space<vmem>>, %arg4: memref<1x32xf32, #tpu.memory_space<vmem>>, %arg5: memref<16x32xbf16, #tpu.memory_space<vmem>>) attributes {dimension_semantics = [#tpu.dimension_semantics<parallel>, #tpu.dimension_semantics<parallel>], iteration_bounds = array<i64: 1, 1>, scalar_prefetch = 0 : i64, scratch_operands = 0 : i64, tpu.core_type = #tpu.core_type<tc>, window_params = [{transform_indices = @transform_0, window_bounds = array<i64: 16, 32>}, {transform_indices = @transform_1, window_bounds = array<i64: 32, 32>}, {transform_indices = @transform_2, window_bounds = array<i64: 1, 32>}, {transform_indices = @transform_3, window_bounds = array<i64: 16, 32>}]} {
    %c0 = arith.constant 0 : index
    %c0_0 = arith.constant 0 : index
    %0 = vector.load %arg2[%c0, %c0_0] : memref<16x32xf32, #tpu.memory_space<vmem>>, vector<16x32xf32>
    %1 = arith.truncf %0 : vector<16x32xf32> to vector<16x32xbf16>
    %c0_1 = arith.constant 0 : index
    %c0_2 = arith.constant 0 : index
    %2 = vector.load %arg3[%c0_1, %c0_2] : memref<32x32xbf16, #tpu.memory_space<vmem>>, vector<32x32xbf16>
    %cst = arith.constant dense<0.000000e+00> : vector<16x32xf32>
    %3 = tpu.matmul %1, %2, %cst {dimension_numbers = #tpu.dot_dimension_numbers<[1], [0], [0], [1], [0, 0, 1, 1], [], []>} : vector<16x32xbf16>, vector<32x32xbf16>, vector<16x32xf32> -> vector<16x32xf32>
    %c0_3 = arith.constant 0 : index
    %c0_4 = arith.constant 0 : index
    %4 = vector.load %arg4[%c0_3, %c0_4] : memref<1x32xf32, #tpu.memory_space<vmem>>, vector<1x32xf32>
    %5 = vector.broadcast %4 : vector<1x32xf32> to vector<16x32xf32>
    %6 = arith.addf %3, %5 : vector<16x32xf32>
    %7 = arith.truncf %6 : vector<16x32xf32> to vector<16x32xbf16>
    %c0_5 = arith.constant 0 : index
    %c0_6 = arith.constant 0 : index
    %8 = vector.load %arg5[%c0_5, %c0_6] : memref<16x32xbf16, #tpu.memory_space<vmem>>, vector<16x32xbf16>
    tpu.vector_store %arg5[%c0_5, %c0_6], %7 {strides = array<i32>} : memref<16x32xbf16, #tpu.memory_space<vmem>>, vector<16x32xbf16>,
    return
  }
  func.func @transform_0(%arg0: i32, %arg1: i32) -> (i32, i32) {
    %c0_i32 = arith.constant 0 : i32
    %c0_i32_0 = arith.constant 0 : i32
    return %arg0, %c0_i32 : i32, i32
  }
  func.func @transform_1(%arg0: i32, %arg1: i32) -> (i32, i32) {
    %c0_i32 = arith.constant 0 : i32
    %c0_i32_0 = arith.constant 0 : i32
    return %c0_i32, %arg1 : i32, i32
  }
  func.func @transform_2(%arg0: i32, %arg1: i32) -> (i32, i32) {
    %c0_i32 = arith.constant 0 : i32
    %c0_i32_0 = arith.constant 0 : i32
    return %c0_i32, %arg1 : i32, i32
  }
  func.func @transform_3(%arg0: i32, %arg1: i32) -> (i32, i32) {
    %c0_i32 = arith.constant 0 : i32
    return %arg0, %arg1 : i32, i32
  }
}

module attributes {stable_mosaic.version = 11 : i64} {
  func.func @_self_attn_kernel(%arg0: i32, %arg1: memref<1x8x96xbf16, #tpu.memory_space<vmem>>, %arg2: memref<1x8x8xi8, #tpu.memory_space<vmem>>, %arg3: memref<1x8x32xbf16, #tpu.memory_space<vmem>>) attributes {dimension_semantics = [#tpu.dimension_semantics<parallel>], iteration_bounds = array<i64: 2>, scalar_prefetch = 0 : i64, scratch_operands = 0 : i64, tpu.core_type = #tpu.core_type<tc>, window_params = [{transform_indices = @transform_0, window_bounds = array<i64: 1, 8, 96>}, {transform_indices = @transform_1, window_bounds = array<i64: 1, 8, 8>}, {transform_indices = @transform_2, window_bounds = array<i64: 1, 8, 32>}]} {
    %c0 = arith.constant 0 : index
    %c0_0 = arith.constant 0 : index
    %c0_1 = arith.constant 0 : index
    %0 = vector.load %arg1[%c0, %c0_0, %c0_1] : memref<1x8x96xbf16, #tpu.memory_space<vmem>>, vector<1x8x96xbf16>
    %1 = vector.shape_cast %0 : vector<1x8x96xbf16> to vector<8x96xbf16>
    %2 = vector.extract_strided_slice %1 {offsets = [0, 0], sizes = [8, 32], strides = [1, 1]} : vector<8x96xbf16> to vector<8x32xbf16>
    %3 = vector.extract_strided_slice %1 {offsets = [0, 32], sizes = [8, 32], strides = [1, 1]} : vector<8x96xbf16> to vector<8x32xbf16>
    %4 = vector.extract_strided_slice %1 {offsets = [0, 64], sizes = [8, 32], strides = [1, 1]} : vector<8x96xbf16> to vector<8x32xbf16>
    %c0_2 = arith.constant 0 : index
    %c0_3 = arith.constant 0 : index
    %c0_4 = arith.constant 0 : index
    %5 = vector.load %arg2[%c0_2, %c0_3, %c0_4] : memref<1x8x8xi8, #tpu.memory_space<vmem>>, vector<1x8x8xi8>
    %6 = vector.shape_cast %5 : vector<1x8x8xi8> to vector<8x8xi8>
    %c0_i8 = arith.constant 0 : i8
    %7 = vector.broadcast %c0_i8 : i8 to vector<8x8xi8>
    %8 = arith.cmpi ne, %6, %7 : vector<8x8xi8>
    %9 = vector.extract_strided_slice %2 {offsets = [0, 0], sizes = [8, 8], strides = [1, 1]} : vector<8x32xbf16> to vector<8x8xbf16>
    %10 = vector.extract_strided_slice %3 {offsets = [0, 0], sizes = [8, 8], strides = [1, 1]} : vector<8x32xbf16> to vector<8x8xbf16>
    %cst = arith.constant dense<0.000000e+00> : vector<8x8xf32>
    %11 = tpu.matmul %9, %10, %cst {dimension_numbers = #tpu.dot_dimension_numbers<[1], [1], [0], [0], [0, 0, 1, 0], [], []>} : vector<8x8xbf16>, vector<8x8xbf16>, vector<8x8xf32> -> vector<8x8xf32>
    %cst_5 = arith.constant 0.353553385 : f32
    %12 = vector.broadcast %cst_5 : f32 to vector<8x8xf32>
    %13 = arith.mulf %11, %12 : vector<8x8xf32>
    %cst_6 = arith.constant -1.000000e+30 : f32
    %14 = vector.broadcast %cst_6 : f32 to vector<8x8xf32>
    %15 = arith.select %8, %13, %14 : vector<8x8xi1>, vector<8x8xf32>
    %cst_7 = arith.constant dense<0xFF800000> : vector<8xf32>
    %16 = vector.multi_reduction <maximumf>, %15, %cst_7 [1] : vector<8x8xf32> to vector<8xf32>
    %17 = vector.shape_cast %16 : vector<8xf32> to vector<8x1xf32>
    %18 = vector.broadcast %17 : vector<8x1xf32> to vector<8x8xf32>
    %19 = arith.subf %15, %18 : vector<8x8xf32>
    %20 = math.exp %19 : vector<8x8xf32>
    %cst_8 = arith.constant dense<0.000000e+00> : vector<8xf32>
    %21 = vector.multi_reduction <add>, %20, %cst_8 [1] : vector<8x8xf32> to vector<8xf32>
    %22 = vector.shape_cast %21 : vector<8xf32> to vector<8x1xf32>
    %23 = vector.broadcast %22 : vector<8x1xf32> to vector<8x8xf32>
    %24 = arith.divf %20, %23 : vector<8x8xf32>
    %25 = arith.truncf %24 : vector<8x8xf32> to vector<8x8xbf16>
    %26 = vector.extract_strided_slice %4 {offsets = [0, 0], sizes = [8, 8], strides = [1, 1]} : vector<8x32xbf16> to vector<8x8xbf16>
    %cst_9 = arith.constant dense<0.000000e+00> : vector<8x8xf32>
    %27 = tpu.matmul %25, %26, %cst_9 {dimension_numbers = #tpu.dot_dimension_numbers<[1], [0], [0], [1], [0, 0, 1, 1], [], []>} : vector<8x8xbf16>, vector<8x8xbf16>, vector<8x8xf32> -> vector<8x8xf32>
    %28 = arith.truncf %27 : vector<8x8xf32> to vector<8x8xbf16>
    %c0_10 = arith.constant 0 : index
    %c0_11 = arith.constant 0 : index
    %c0_12 = arith.constant 0 : index
    %29 = vector.load %arg3[%c0_10, %c0_11, %c0_12] : memref<1x8x32xbf16, #tpu.memory_space<vmem>>, vector<1x8x8xbf16>
    %30 = vector.shape_cast %29 : vector<1x8x8xbf16> to vector<8x8xbf16>
    %31 = vector.shape_cast %28 : vector<8x8xbf16> to vector<1x8x8xbf16>
    tpu.vector_store %arg3[%c0_10, %c0_11, %c0_12], %31 {strides = array<i32>} : memref<1x8x32xbf16, #tpu.memory_space<vmem>>, vector<1x8x8xbf16>,
    %32 = vector.extract_strided_slice %2 {offsets = [0, 8], sizes = [8, 8], strides = [1, 1]} : vector<8x32xbf16> to vector<8x8xbf16>
    %33 = vector.extract_strided_slice %3 {offsets = [0, 8], sizes = [8, 8], strides = [1, 1]} : vector<8x32xbf16> to vector<8x8xbf16>
    %cst_13 = arith.constant dense<0.000000e+00> : vector<8x8xf32>
    %34 = tpu.matmul %32, %33, %cst_13 {dimension_numbers = #tpu.dot_dimension_numbers<[1], [1], [0], [0], [0, 0, 1, 0], [], []>} : vector<8x8xbf16>, vector<8x8xbf16>, vector<8x8xf32> -> vector<8x8xf32>
    %cst_14 = arith.constant 0.353553385 : f32
    %35 = vector.broadcast %cst_14 : f32 to vector<8x8xf32>
    %36 = arith.mulf %34, %35 : vector<8x8xf32>
    %cst_15 = arith.constant -1.000000e+30 : f32
    %37 = vector.broadcast %cst_15 : f32 to vector<8x8xf32>
    %38 = arith.select %8, %36, %37 : vector<8x8xi1>, vector<8x8xf32>
    %cst_16 = arith.constant dense<0xFF800000> : vector<8xf32>
    %39 = vector.multi_reduction <maximumf>, %38, %cst_16 [1] : vector<8x8xf32> to vector<8xf32>
    %40 = vector.shape_cast %39 : vector<8xf32> to vector<8x1xf32>
    %41 = vector.broadcast %40 : vector<8x1xf32> to vector<8x8xf32>
    %42 = arith.subf %38, %41 : vector<8x8xf32>
    %43 = math.exp %42 : vector<8x8xf32>
    %cst_17 = arith.constant dense<0.000000e+00> : vector<8xf32>
    %44 = vector.multi_reduction <add>, %43, %cst_17 [1] : vector<8x8xf32> to vector<8xf32>
    %45 = vector.shape_cast %44 : vector<8xf32> to vector<8x1xf32>
    %46 = vector.broadcast %45 : vector<8x1xf32> to vector<8x8xf32>
    %47 = arith.divf %43, %46 : vector<8x8xf32>
    %48 = arith.truncf %47 : vector<8x8xf32> to vector<8x8xbf16>
    %49 = vector.extract_strided_slice %4 {offsets = [0, 8], sizes = [8, 8], strides = [1, 1]} : vector<8x32xbf16> to vector<8x8xbf16>
    %cst_18 = arith.constant dense<0.000000e+00> : vector<8x8xf32>
    %50 = tpu.matmul %48, %49, %cst_18 {dimension_numbers = #tpu.dot_dimension_numbers<[1], [0], [0], [1], [0, 0, 1, 1], [], []>} : vector<8x8xbf16>, vector<8x8xbf16>, vector<8x8xf32> -> vector<8x8xf32>
    %51 = arith.truncf %50 : vector<8x8xf32> to vector<8x8xbf16>
    %c0_19 = arith.constant 0 : index
    %c0_20 = arith.constant 0 : index
    %c8 = arith.constant 8 : index
    %52 = vector.load %arg3[%c0_19, %c0_20, %c8] : memref<1x8x32xbf16, #tpu.memory_space<vmem>>, vector<1x8x8xbf16>
    %53 = vector.shape_cast %52 : vector<1x8x8xbf16> to vector<8x8xbf16>
    %54 = vector.shape_cast %51 : vector<8x8xbf16> to vector<1x8x8xbf16>
    tpu.vector_store %arg3[%c0_19, %c0_20, %c8], %54 {strides = array<i32>} : memref<1x8x32xbf16, #tpu.memory_space<vmem>>, vector<1x8x8xbf16>,
    %55 = vector.extract_strided_slice %2 {offsets = [0, 16], sizes = [8, 8], strides = [1, 1]} : vector<8x32xbf16> to vector<8x8xbf16>
    %56 = vector.extract_strided_slice %3 {offsets = [0, 16], sizes = [8, 8], strides = [1, 1]} : vector<8x32xbf16> to vector<8x8xbf16>
    %cst_21 = arith.constant dense<0.000000e+00> : vector<8x8xf32>
    %57 = tpu.matmul %55, %56, %cst_21 {dimension_numbers = #tpu.dot_dimension_numbers<[1], [1], [0], [0], [0, 0, 1, 0], [], []>} : vector<8x8xbf16>, vector<8x8xbf16>, vector<8x8xf32> -> vector<8x8xf32>
    %cst_22 = arith.constant 0.353553385 : f32
    %58 = vector.broadcast %cst_22 : f32 to vector<8x8xf32>
    %59 = arith.mulf %57, %58 : vector<8x8xf32>
    %cst_23 = arith.constant -1.000000e+30 : f32
    %60 = vector.broadcast %cst_23 : f32 to vector<8x8xf32>
    %61 = arith.select %8, %59, %60 : vector<8x8xi1>, vector<8x8xf32>
    %cst_24 = arith.constant dense<0xFF800000> : vector<8xf32>
    %62 = vector.multi_reduction <maximumf>, %61, %cst_24 [1] : vector<8x8xf32> to vector<8xf32>
    %63 = vector.shape_cast %62 : vector<8xf32> to vector<8x1xf32>
    %64 = vector.broadcast %63 : vector<8x1xf32> to vector<8x8xf32>
    %65 = arith.subf %61, %64 : vector<8x8xf32>
    %66 = math.exp %65 : vector<8x8xf32>
    %cst_25 = arith.constant dense<0.000000e+00> : vector<8xf32>
    %67 = vector.multi_reduction <add>, %66, %cst_25 [1] : vector<8x8xf32> to vector<8xf32>
    %68 = vector.shape_cast %67 : vector<8xf32> to vector<8x1xf32>
    %69 = vector.broadcast %68 : vector<8x1xf32> to vector<8x8xf32>
    %70 = arith.divf %66, %69 : vector<8x8xf32>
    %71 = arith.truncf %70 : vector<8x8xf32> to vector<8x8xbf16>
    %72 = vector.extract_strided_slice %4 {offsets = [0, 16], sizes = [8, 8], strides = [1, 1]} : vector<8x32xbf16> to vector<8x8xbf16>
    %cst_26 = arith.constant dense<0.000000e+00> : vector<8x8xf32>
    %73 = tpu.matmul %71, %72, %cst_26 {dimension_numbers = #tpu.dot_dimension_numbers<[1], [0], [0], [1], [0, 0, 1, 1], [], []>} : vector<8x8xbf16>, vector<8x8xbf16>, vector<8x8xf32> -> vector<8x8xf32>
    %74 = arith.truncf %73 : vector<8x8xf32> to vector<8x8xbf16>
    %c0_27 = arith.constant 0 : index
    %c0_28 = arith.constant 0 : index
    %c16 = arith.constant 16 : index
    %75 = vector.load %arg3[%c0_27, %c0_28, %c16] : memref<1x8x32xbf16, #tpu.memory_space<vmem>>, vector<1x8x8xbf16>
    %76 = vector.shape_cast %75 : vector<1x8x8xbf16> to vector<8x8xbf16>
    %77 = vector.shape_cast %74 : vector<8x8xbf16> to vector<1x8x8xbf16>
    tpu.vector_store %arg3[%c0_27, %c0_28, %c16], %77 {strides = array<i32>} : memref<1x8x32xbf16, #tpu.memory_space<vmem>>, vector<1x8x8xbf16>,
    %78 = vector.extract_strided_slice %2 {offsets = [0, 24], sizes = [8, 8], strides = [1, 1]} : vector<8x32xbf16> to vector<8x8xbf16>
    %79 = vector.extract_strided_slice %3 {offsets = [0, 24], sizes = [8, 8], strides = [1, 1]} : vector<8x32xbf16> to vector<8x8xbf16>
    %cst_29 = arith.constant dense<0.000000e+00> : vector<8x8xf32>
    %80 = tpu.matmul %78, %79, %cst_29 {dimension_numbers = #tpu.dot_dimension_numbers<[1], [1], [0], [0], [0, 0, 1, 0], [], []>} : vector<8x8xbf16>, vector<8x8xbf16>, vector<8x8xf32> -> vector<8x8xf32>
    %cst_30 = arith.constant 0.353553385 : f32
    %81 = vector.broadcast %cst_30 : f32 to vector<8x8xf32>
    %82 = arith.mulf %80, %81 : vector<8x8xf32>
    %cst_31 = arith.constant -1.000000e+30 : f32
    %83 = vector.broadcast %cst_31 : f32 to vector<8x8xf32>
    %84 = arith.select %8, %82, %83 : vector<8x8xi1>, vector<8x8xf32>
    %cst_32 = arith.constant dense<0xFF800000> : vector<8xf32>
    %85 = vector.multi_reduction <maximumf>, %84, %cst_32 [1] : vector<8x8xf32> to vector<8xf32>
    %86 = vector.shape_cast %85 : vector<8xf32> to vector<8x1xf32>
    %87 = vector.broadcast %86 : vector<8x1xf32> to vector<8x8xf32>
    %88 = arith.subf %84, %87 : vector<8x8xf32>
    %89 = math.exp %88 : vector<8x8xf32>
    %cst_33 = arith.constant dense<0.000000e+00> : vector<8xf32>
    %90 = vector.multi_reduction <add>, %89, %cst_33 [1] : vector<8x8xf32> to vector<8xf32>
    %91 = vector.shape_cast %90 : vector<8xf32> to vector<8x1xf32>
    %92 = vector.broadcast %91 : vector<8x1xf32> to vector<8x8xf32>
    %93 = arith.divf %89, %92 : vector<8x8xf32>
    %94 = arith.truncf %93 : vector<8x8xf32> to vector<8x8xbf16>
    %95 = vector.extract_strided_slice %4 {offsets = [0, 24], sizes = [8, 8], strides = [1, 1]} : vector<8x32xbf16> to vector<8x8xbf16>
    %cst_34 = arith.constant dense<0.000000e+00> : vector<8x8xf32>
    %96 = tpu.matmul %94, %95, %cst_34 {dimension_numbers = #tpu.dot_dimension_numbers<[1], [0], [0], [1], [0, 0, 1, 1], [], []>} : vector<8x8xbf16>, vector<8x8xbf16>, vector<8x8xf32> -> vector<8x8xf32>
    %97 = arith.truncf %96 : vector<8x8xf32> to vector<8x8xbf16>
    %c0_35 = arith.constant 0 : index
    %c0_36 = arith.constant 0 : index
    %c24 = arith.constant 24 : index
    %98 = vector.load %arg3[%c0_35, %c0_36, %c24] : memref<1x8x32xbf16, #tpu.memory_space<vmem>>, vector<1x8x8xbf16>
    %99 = vector.shape_cast %98 : vector<1x8x8xbf16> to vector<8x8xbf16>
    %100 = vector.shape_cast %97 : vector<8x8xbf16> to vector<1x8x8xbf16>
    tpu.vector_store %arg3[%c0_35, %c0_36, %c24], %100 {strides = array<i32>} : memref<1x8x32xbf16, #tpu.memory_space<vmem>>, vector<1x8x8xbf16>,
    return
  }
  func.func @transform_0(%arg0: i32) -> (i32, i32, i32) {
    %c0_i32 = arith.constant 0 : i32
    %c0_i32_0 = arith.constant 0 : i32
    %c0_i32_1 = arith.constant 0 : i32
    return %arg0, %c0_i32, %c0_i32_0 : i32, i32, i32
  }
  func.func @transform_1(%arg0: i32) -> (i32, i32, i32) {
    %c0_i32 = arith.constant 0 : i32
    %c0_i32_0 = arith.constant 0 : i32
    %c0_i32_1 = arith.constant 0 : i32
    return %arg0, %c0_i32, %c0_i32_0 : i32, i32, i32
  }
  func.func @transform_2(%arg0: i32) -> (i32, i32, i32) {
    %c0_i32 = arith.constant 0 : i32
    %c0_i32_0 = arith.constant 0 : i32
    %c0_i32_1 = arith.constant 0 : i32
    return %arg0, %c0_i32, %c0_i32_0 : i32, i32, i32
  }
}

module attributes {stable_mosaic.version = 11 : i64} {
  func.func @_linear_kernel(%arg0: i32, %arg1: i32, %arg2: memref<20x32xf32, #tpu.memory_space<vmem>>, %arg3: memref<32x64xbf16, #tpu.memory_space<vmem>>, %arg4: memref<1x64xf32, #tpu.memory_space<vmem>>, %arg5: memref<20x64xbf16, #tpu.memory_space<vmem>>) attributes {dimension_semantics = [#tpu.dimension_semantics<parallel>, #tpu.dimension_semantics<parallel>], iteration_bounds = array<i64: 1, 1>, scalar_prefetch = 0 : i64, scratch_operands = 0 : i64, tpu.core_type = #tpu.core_type<tc>, window_params = [{transform_indices = @transform_0, window_bounds = array<i64: 20, 32>}, {transform_indices = @transform_1, window_bounds = array<i64: 32, 64>}, {transform_indices = @transform_2, window_bounds = array<i64: 1, 64>}, {transform_indices = @transform_3, window_bounds = array<i64: 20, 64>}]} {
    %c0 = arith.constant 0 : index
    %c0_0 = arith.constant 0 : index
    %0 = vector.load %arg2[%c0, %c0_0] : memref<20x32xf32, #tpu.memory_space<vmem>>, vector<20x32xf32>
    %1 = arith.truncf %0 : vector<20x32xf32> to vector<20x32xbf16>
    %c0_1 = arith.constant 0 : index
    %c0_2 = arith.constant 0 : index
    %2 = vector.load %arg3[%c0_1, %c0_2] : memref<32x64xbf16, #tpu.memory_space<vmem>>, vector<32x64xbf16>
    %cst = arith.constant dense<0.000000e+00> : vector<20x64xf32>
    %3 = tpu.matmul %1, %2, %cst {dimension_numbers = #tpu.dot_dimension_numbers<[1], [0], [0], [1], [0, 0, 1, 1], [], []>} : vector<20x32xbf16>, vector<32x64xbf16>, vector<20x64xf32> -> vector<20x64xf32>
    %c0_3 = arith.constant 0 : index
    %c0_4 = arith.constant 0 : index
    %4 = vector.load %arg4[%c0_3, %c0_4] : memref<1x64xf32, #tpu.memory_space<vmem>>, vector<1x64xf32>
    %5 = vector.broadcast %4 : vector<1x64xf32> to vector<20x64xf32>
    %6 = arith.addf %3, %5 : vector<20x64xf32>
    %7 = arith.truncf %6 : vector<20x64xf32> to vector<20x64xbf16>
    %c0_5 = arith.constant 0 : index
    %c0_6 = arith.constant 0 : index
    %8 = vector.load %arg5[%c0_5, %c0_6] : memref<20x64xbf16, #tpu.memory_space<vmem>>, vector<20x64xbf16>
    tpu.vector_store %arg5[%c0_5, %c0_6], %7 {strides = array<i32>} : memref<20x64xbf16, #tpu.memory_space<vmem>>, vector<20x64xbf16>,
    return
  }
  func.func @transform_0(%arg0: i32, %arg1: i32) -> (i32, i32) {
    %c0_i32 = arith.constant 0 : i32
    %c0_i32_0 = arith.constant 0 : i32
    return %arg0, %c0_i32 : i32, i32
  }
  func.func @transform_1(%arg0: i32, %arg1: i32) -> (i32, i32) {
    %c0_i32 = arith.constant 0 : i32
    %c0_i32_0 = arith.constant 0 : i32
    return %c0_i32, %arg1 : i32, i32
  }
  func.func @transform_2(%arg0: i32, %arg1: i32) -> (i32, i32) {
    %c0_i32 = arith.constant 0 : i32
    %c0_i32_0 = arith.constant 0 : i32
    return %c0_i32, %arg1 : i32, i32
  }
  func.func @transform_3(%arg0: i32, %arg1: i32) -> (i32, i32) {
    %c0_i32 = arith.constant 0 : i32
    return %arg0, %arg1 : i32, i32
  }
}

module attributes {stable_mosaic.version = 11 : i64} {
  func.func @_cross_attn_kernel(%arg0: i32, %arg1: memref<1x8x32xbf16, #tpu.memory_space<vmem>>, %arg2: memref<1x10x64xbf16, #tpu.memory_space<vmem>>, %arg3: memref<1x8x10xi8, #tpu.memory_space<vmem>>, %arg4: memref<1x8x32xbf16, #tpu.memory_space<vmem>>) attributes {dimension_semantics = [#tpu.dimension_semantics<parallel>], iteration_bounds = array<i64: 2>, scalar_prefetch = 0 : i64, scratch_operands = 0 : i64, tpu.core_type = #tpu.core_type<tc>, window_params = [{transform_indices = @transform_0, window_bounds = array<i64: 1, 8, 32>}, {transform_indices = @transform_1, window_bounds = array<i64: 1, 10, 64>}, {transform_indices = @transform_2, window_bounds = array<i64: 1, 8, 10>}, {transform_indices = @transform_3, window_bounds = array<i64: 1, 8, 32>}]} {
    %c0 = arith.constant 0 : index
    %c0_0 = arith.constant 0 : index
    %c0_1 = arith.constant 0 : index
    %0 = vector.load %arg2[%c0, %c0_0, %c0_1] : memref<1x10x64xbf16, #tpu.memory_space<vmem>>, vector<1x10x64xbf16>
    %1 = vector.shape_cast %0 : vector<1x10x64xbf16> to vector<10x64xbf16>
    %c0_2 = arith.constant 0 : index
    %c0_3 = arith.constant 0 : index
    %c0_4 = arith.constant 0 : index
    %2 = vector.load %arg1[%c0_2, %c0_3, %c0_4] : memref<1x8x32xbf16, #tpu.memory_space<vmem>>, vector<1x8x32xbf16>
    %3 = vector.shape_cast %2 : vector<1x8x32xbf16> to vector<8x32xbf16>
    %4 = vector.extract_strided_slice %1 {offsets = [0, 0], sizes = [10, 32], strides = [1, 1]} : vector<10x64xbf16> to vector<10x32xbf16>
    %5 = vector.extract_strided_slice %1 {offsets = [0, 32], sizes = [10, 32], strides = [1, 1]} : vector<10x64xbf16> to vector<10x32xbf16>
    %c0_5 = arith.constant 0 : index
    %c0_6 = arith.constant 0 : index
    %c0_7 = arith.constant 0 : index
    %6 = vector.load %arg3[%c0_5, %c0_6, %c0_7] : memref<1x8x10xi8, #tpu.memory_space<vmem>>, vector<1x8x10xi8>
    %7 = vector.shape_cast %6 : vector<1x8x10xi8> to vector<8x10xi8>
    %c0_i8 = arith.constant 0 : i8
    %8 = vector.broadcast %c0_i8 : i8 to vector<8x10xi8>
    %9 = arith.cmpi ne, %7, %8 : vector<8x10xi8>
    %10 = vector.extract_strided_slice %3 {offsets = [0, 0], sizes = [8, 8], strides = [1, 1]} : vector<8x32xbf16> to vector<8x8xbf16>
    %11 = vector.extract_strided_slice %4 {offsets = [0, 0], sizes = [10, 8], strides = [1, 1]} : vector<10x32xbf16> to vector<10x8xbf16>
    %cst = arith.constant dense<0.000000e+00> : vector<8x10xf32>
    %12 = tpu.matmul %10, %11, %cst {dimension_numbers = #tpu.dot_dimension_numbers<[1], [1], [0], [0], [0, 0, 1, 0], [], []>} : vector<8x8xbf16>, vector<10x8xbf16>, vector<8x10xf32> -> vector<8x10xf32>
    %cst_8 = arith.constant 0.353553385 : f32
    %13 = vector.broadcast %cst_8 : f32 to vector<8x10xf32>
    %14 = arith.mulf %12, %13 : vector<8x10xf32>
    %cst_9 = arith.constant -1.000000e+30 : f32
    %15 = vector.broadcast %cst_9 : f32 to vector<8x10xf32>
    %16 = arith.select %9, %14, %15 : vector<8x10xi1>, vector<8x10xf32>
    %cst_10 = arith.constant dense<0xFF800000> : vector<8xf32>
    %17 = vector.multi_reduction <maximumf>, %16, %cst_10 [1] : vector<8x10xf32> to vector<8xf32>
    %18 = vector.shape_cast %17 : vector<8xf32> to vector<8x1xf32>
    %19 = vector.broadcast %18 : vector<8x1xf32> to vector<8x10xf32>
    %20 = arith.subf %16, %19 : vector<8x10xf32>
    %21 = math.exp %20 : vector<8x10xf32>
    %cst_11 = arith.constant dense<0.000000e+00> : vector<8xf32>
    %22 = vector.multi_reduction <add>, %21, %cst_11 [1] : vector<8x10xf32> to vector<8xf32>
    %23 = vector.shape_cast %22 : vector<8xf32> to vector<8x1xf32>
    %24 = vector.broadcast %23 : vector<8x1xf32> to vector<8x10xf32>
    %25 = arith.divf %21, %24 : vector<8x10xf32>
    %26 = arith.truncf %25 : vector<8x10xf32> to vector<8x10xbf16>
    %27 = vector.extract_strided_slice %5 {offsets = [0, 0], sizes = [10, 8], strides = [1, 1]} : vector<10x32xbf16> to vector<10x8xbf16>
    %cst_12 = arith.constant dense<0.000000e+00> : vector<8x8xf32>
    %28 = tpu.matmul %26, %27, %cst_12 {dimension_numbers = #tpu.dot_dimension_numbers<[1], [0], [0], [1], [0, 0, 1, 1], [], []>} : vector<8x10xbf16>, vector<10x8xbf16>, vector<8x8xf32> -> vector<8x8xf32>
    %29 = arith.truncf %28 : vector<8x8xf32> to vector<8x8xbf16>
    %c0_13 = arith.constant 0 : index
    %c0_14 = arith.constant 0 : index
    %c0_15 = arith.constant 0 : index
    %30 = vector.load %arg4[%c0_13, %c0_14, %c0_15] : memref<1x8x32xbf16, #tpu.memory_space<vmem>>, vector<1x8x8xbf16>
    %31 = vector.shape_cast %30 : vector<1x8x8xbf16> to vector<8x8xbf16>
    %32 = vector.shape_cast %29 : vector<8x8xbf16> to vector<1x8x8xbf16>
    tpu.vector_store %arg4[%c0_13, %c0_14, %c0_15], %32 {strides = array<i32>} : memref<1x8x32xbf16, #tpu.memory_space<vmem>>, vector<1x8x8xbf16>,
    %33 = vector.extract_strided_slice %3 {offsets = [0, 8], sizes = [8, 8], strides = [1, 1]} : vector<8x32xbf16> to vector<8x8xbf16>
    %34 = vector.extract_strided_slice %4 {offsets = [0, 8], sizes = [10, 8], strides = [1, 1]} : vector<10x32xbf16> to vector<10x8xbf16>
    %cst_16 = arith.constant dense<0.000000e+00> : vector<8x10xf32>
    %35 = tpu.matmul %33, %34, %cst_16 {dimension_numbers = #tpu.dot_dimension_numbers<[1], [1], [0], [0], [0, 0, 1, 0], [], []>} : vector<8x8xbf16>, vector<10x8xbf16>, vector<8x10xf32> -> vector<8x10xf32>
    %cst_17 = arith.constant 0.353553385 : f32
    %36 = vector.broadcast %cst_17 : f32 to vector<8x10xf32>
    %37 = arith.mulf %35, %36 : vector<8x10xf32>
    %cst_18 = arith.constant -1.000000e+30 : f32
    %38 = vector.broadcast %cst_18 : f32 to vector<8x10xf32>
    %39 = arith.select %9, %37, %38 : vector<8x10xi1>, vector<8x10xf32>
    %cst_19 = arith.constant dense<0xFF800000> : vector<8xf32>
    %40 = vector.multi_reduction <maximumf>, %39, %cst_19 [1] : vector<8x10xf32> to vector<8xf32>
    %41 = vector.shape_cast %40 : vector<8xf32> to vector<8x1xf32>
    %42 = vector.broadcast %41 : vector<8x1xf32> to vector<8x10xf32>
    %43 = arith.subf %39, %42 : vector<8x10xf32>
    %44 = math.exp %43 : vector<8x10xf32>
    %cst_20 = arith.constant dense<0.000000e+00> : vector<8xf32>
    %45 = vector.multi_reduction <add>, %44, %cst_20 [1] : vector<8x10xf32> to vector<8xf32>
    %46 = vector.shape_cast %45 : vector<8xf32> to vector<8x1xf32>
    %47 = vector.broadcast %46 : vector<8x1xf32> to vector<8x10xf32>
    %48 = arith.divf %44, %47 : vector<8x10xf32>
    %49 = arith.truncf %48 : vector<8x10xf32> to vector<8x10xbf16>
    %50 = vector.extract_strided_slice %5 {offsets = [0, 8], sizes = [10, 8], strides = [1, 1]} : vector<10x32xbf16> to vector<10x8xbf16>
    %cst_21 = arith.constant dense<0.000000e+00> : vector<8x8xf32>
    %51 = tpu.matmul %49, %50, %cst_21 {dimension_numbers = #tpu.dot_dimension_numbers<[1], [0], [0], [1], [0, 0, 1, 1], [], []>} : vector<8x10xbf16>, vector<10x8xbf16>, vector<8x8xf32> -> vector<8x8xf32>
    %52 = arith.truncf %51 : vector<8x8xf32> to vector<8x8xbf16>
    %c0_22 = arith.constant 0 : index
    %c0_23 = arith.constant 0 : index
    %c8 = arith.constant 8 : index
    %53 = vector.load %arg4[%c0_22, %c0_23, %c8] : memref<1x8x32xbf16, #tpu.memory_space<vmem>>, vector<1x8x8xbf16>
    %54 = vector.shape_cast %53 : vector<1x8x8xbf16> to vector<8x8xbf16>
    %55 = vector.shape_cast %52 : vector<8x8xbf16> to vector<1x8x8xbf16>
    tpu.vector_store %arg4[%c0_22, %c0_23, %c8], %55 {strides = array<i32>} : memref<1x8x32xbf16, #tpu.memory_space<vmem>>, vector<1x8x8xbf16>,
    %56 = vector.extract_strided_slice %3 {offsets = [0, 16], sizes = [8, 8], strides = [1, 1]} : vector<8x32xbf16> to vector<8x8xbf16>
    %57 = vector.extract_strided_slice %4 {offsets = [0, 16], sizes = [10, 8], strides = [1, 1]} : vector<10x32xbf16> to vector<10x8xbf16>
    %cst_24 = arith.constant dense<0.000000e+00> : vector<8x10xf32>
    %58 = tpu.matmul %56, %57, %cst_24 {dimension_numbers = #tpu.dot_dimension_numbers<[1], [1], [0], [0], [0, 0, 1, 0], [], []>} : vector<8x8xbf16>, vector<10x8xbf16>, vector<8x10xf32> -> vector<8x10xf32>
    %cst_25 = arith.constant 0.353553385 : f32
    %59 = vector.broadcast %cst_25 : f32 to vector<8x10xf32>
    %60 = arith.mulf %58, %59 : vector<8x10xf32>
    %cst_26 = arith.constant -1.000000e+30 : f32
    %61 = vector.broadcast %cst_26 : f32 to vector<8x10xf32>
    %62 = arith.select %9, %60, %61 : vector<8x10xi1>, vector<8x10xf32>
    %cst_27 = arith.constant dense<0xFF800000> : vector<8xf32>
    %63 = vector.multi_reduction <maximumf>, %62, %cst_27 [1] : vector<8x10xf32> to vector<8xf32>
    %64 = vector.shape_cast %63 : vector<8xf32> to vector<8x1xf32>
    %65 = vector.broadcast %64 : vector<8x1xf32> to vector<8x10xf32>
    %66 = arith.subf %62, %65 : vector<8x10xf32>
    %67 = math.exp %66 : vector<8x10xf32>
    %cst_28 = arith.constant dense<0.000000e+00> : vector<8xf32>
    %68 = vector.multi_reduction <add>, %67, %cst_28 [1] : vector<8x10xf32> to vector<8xf32>
    %69 = vector.shape_cast %68 : vector<8xf32> to vector<8x1xf32>
    %70 = vector.broadcast %69 : vector<8x1xf32> to vector<8x10xf32>
    %71 = arith.divf %67, %70 : vector<8x10xf32>
    %72 = arith.truncf %71 : vector<8x10xf32> to vector<8x10xbf16>
    %73 = vector.extract_strided_slice %5 {offsets = [0, 16], sizes = [10, 8], strides = [1, 1]} : vector<10x32xbf16> to vector<10x8xbf16>
    %cst_29 = arith.constant dense<0.000000e+00> : vector<8x8xf32>
    %74 = tpu.matmul %72, %73, %cst_29 {dimension_numbers = #tpu.dot_dimension_numbers<[1], [0], [0], [1], [0, 0, 1, 1], [], []>} : vector<8x10xbf16>, vector<10x8xbf16>, vector<8x8xf32> -> vector<8x8xf32>
    %75 = arith.truncf %74 : vector<8x8xf32> to vector<8x8xbf16>
    %c0_30 = arith.constant 0 : index
    %c0_31 = arith.constant 0 : index
    %c16 = arith.constant 16 : index
    %76 = vector.load %arg4[%c0_30, %c0_31, %c16] : memref<1x8x32xbf16, #tpu.memory_space<vmem>>, vector<1x8x8xbf16>
    %77 = vector.shape_cast %76 : vector<1x8x8xbf16> to vector<8x8xbf16>
    %78 = vector.shape_cast %75 : vector<8x8xbf16> to vector<1x8x8xbf16>
    tpu.vector_store %arg4[%c0_30, %c0_31, %c16], %78 {strides = array<i32>} : memref<1x8x32xbf16, #tpu.memory_space<vmem>>, vector<1x8x8xbf16>,
    %79 = vector.extract_strided_slice %3 {offsets = [0, 24], sizes = [8, 8], strides = [1, 1]} : vector<8x32xbf16> to vector<8x8xbf16>
    %80 = vector.extract_strided_slice %4 {offsets = [0, 24], sizes = [10, 8], strides = [1, 1]} : vector<10x32xbf16> to vector<10x8xbf16>
    %cst_32 = arith.constant dense<0.000000e+00> : vector<8x10xf32>
    %81 = tpu.matmul %79, %80, %cst_32 {dimension_numbers = #tpu.dot_dimension_numbers<[1], [1], [0], [0], [0, 0, 1, 0], [], []>} : vector<8x8xbf16>, vector<10x8xbf16>, vector<8x10xf32> -> vector<8x10xf32>
    %cst_33 = arith.constant 0.353553385 : f32
    %82 = vector.broadcast %cst_33 : f32 to vector<8x10xf32>
    %83 = arith.mulf %81, %82 : vector<8x10xf32>
    %cst_34 = arith.constant -1.000000e+30 : f32
    %84 = vector.broadcast %cst_34 : f32 to vector<8x10xf32>
    %85 = arith.select %9, %83, %84 : vector<8x10xi1>, vector<8x10xf32>
    %cst_35 = arith.constant dense<0xFF800000> : vector<8xf32>
    %86 = vector.multi_reduction <maximumf>, %85, %cst_35 [1] : vector<8x10xf32> to vector<8xf32>
    %87 = vector.shape_cast %86 : vector<8xf32> to vector<8x1xf32>
    %88 = vector.broadcast %87 : vector<8x1xf32> to vector<8x10xf32>
    %89 = arith.subf %85, %88 : vector<8x10xf32>
    %90 = math.exp %89 : vector<8x10xf32>
    %cst_36 = arith.constant dense<0.000000e+00> : vector<8xf32>
    %91 = vector.multi_reduction <add>, %90, %cst_36 [1] : vector<8x10xf32> to vector<8xf32>
    %92 = vector.shape_cast %91 : vector<8xf32> to vector<8x1xf32>
    %93 = vector.broadcast %92 : vector<8x1xf32> to vector<8x10xf32>
    %94 = arith.divf %90, %93 : vector<8x10xf32>
    %95 = arith.truncf %94 : vector<8x10xf32> to vector<8x10xbf16>
    %96 = vector.extract_strided_slice %5 {offsets = [0, 24], sizes = [10, 8], strides = [1, 1]} : vector<10x32xbf16> to vector<10x8xbf16>
    %cst_37 = arith.constant dense<0.000000e+00> : vector<8x8xf32>
    %97 = tpu.matmul %95, %96, %cst_37 {dimension_numbers = #tpu.dot_dimension_numbers<[1], [0], [0], [1], [0, 0, 1, 1], [], []>} : vector<8x10xbf16>, vector<10x8xbf16>, vector<8x8xf32> -> vector<8x8xf32>
    %98 = arith.truncf %97 : vector<8x8xf32> to vector<8x8xbf16>
    %c0_38 = arith.constant 0 : index
    %c0_39 = arith.constant 0 : index
    %c24 = arith.constant 24 : index
    %99 = vector.load %arg4[%c0_38, %c0_39, %c24] : memref<1x8x32xbf16, #tpu.memory_space<vmem>>, vector<1x8x8xbf16>
    %100 = vector.shape_cast %99 : vector<1x8x8xbf16> to vector<8x8xbf16>
    %101 = vector.shape_cast %98 : vector<8x8xbf16> to vector<1x8x8xbf16>
    tpu.vector_store %arg4[%c0_38, %c0_39, %c24], %101 {strides = array<i32>} : memref<1x8x32xbf16, #tpu.memory_space<vmem>>, vector<1x8x8xbf16>,
    return
  }
  func.func @transform_0(%arg0: i32) -> (i32, i32, i32) {
    %c0_i32 = arith.constant 0 : i32
    %c0_i32_0 = arith.constant 0 : i32
    %c0_i32_1 = arith.constant 0 : i32
    return %arg0, %c0_i32, %c0_i32_0 : i32, i32, i32
  }
  func.func @transform_1(%arg0: i32) -> (i32, i32, i32) {
    %c0_i32 = arith.constant 0 : i32
    %c0_i32_0 = arith.constant 0 : i32
    %c0_i32_1 = arith.constant 0 : i32
    return %arg0, %c0_i32, %c0_i32_0 : i32, i32, i32
  }
  func.func @transform_2(%arg0: i32) -> (i32, i32, i32) {
    %c0_i32 = arith.constant 0 : i32
    %c0_i32_0 = arith.constant 0 : i32
    %c0_i32_1 = arith.constant 0 : i32
    return %arg0, %c0_i32, %c0_i32_0 : i32, i32, i32
  }
  func.func @transform_3(%arg0: i32) -> (i32, i32, i32) {
    %c0_i32 = arith.constant 0 : i32
    %c0_i32_0 = arith.constant 0 : i32
    %c0_i32_1 = arith.constant 0 : i32
    return %arg0, %c0_i32, %c0_i32_0 : i32, i32, i32
  }
}

module attributes {stable_mosaic.version = 11 : i64} {
  func.func @_router_kernel(%arg0: i32, %arg1: memref<16x32xf32, #tpu.memory_space<vmem>>, %arg2: memref<32x4xbf16, #tpu.memory_space<vmem>>, %arg3: memref<1x4xf32, #tpu.memory_space<vmem>>, %arg4: memref<16x4xf32, #tpu.memory_space<vmem>>, %arg5: memref<16x1xi32, #tpu.memory_space<vmem>>, %arg6: memref<16x1xf32, #tpu.memory_space<vmem>>) attributes {dimension_semantics = [#tpu.dimension_semantics<parallel>], iteration_bounds = array<i64: 1>, scalar_prefetch = 0 : i64, scratch_operands = 0 : i64, tpu.core_type = #tpu.core_type<tc>, window_params = [{transform_indices = @transform_0, window_bounds = array<i64: 16, 32>}, {pipeline_mode = #tpu.pipeline_mode<synchronous>, transform_indices = @transform_1, window_bounds = array<i64: 32, 4>}, {pipeline_mode = #tpu.pipeline_mode<synchronous>, transform_indices = @transform_2, window_bounds = array<i64: 1, 4>}, {transform_indices = @transform_3, window_bounds = array<i64: 16, 4>}, {transform_indices = @transform_4, window_bounds = array<i64: 16, 1>}, {transform_indices = @transform_5, window_bounds = array<i64: 16, 1>}]} {
    %c0 = arith.constant 0 : index
    %c0_0 = arith.constant 0 : index
    %0 = vector.load %arg1[%c0, %c0_0] : memref<16x32xf32, #tpu.memory_space<vmem>>, vector<16x32xf32>
    %1 = arith.truncf %0 : vector<16x32xf32> to vector<16x32xbf16>
    %c0_1 = arith.constant 0 : index
    %c0_2 = arith.constant 0 : index
    %2 = vector.load %arg2[%c0_1, %c0_2] : memref<32x4xbf16, #tpu.memory_space<vmem>>, vector<32x4xbf16>
    %cst = arith.constant dense<0.000000e+00> : vector<16x4xf32>
    %3 = tpu.matmul %1, %2, %cst {dimension_numbers = #tpu.dot_dimension_numbers<[1], [0], [0], [1], [0, 0, 1, 1], [], []>} : vector<16x32xbf16>, vector<32x4xbf16>, vector<16x4xf32> -> vector<16x4xf32>
    %c0_3 = arith.constant 0 : index
    %c0_4 = arith.constant 0 : index
    %4 = vector.load %arg3[%c0_3, %c0_4] : memref<1x4xf32, #tpu.memory_space<vmem>>, vector<1x4xf32>
    %5 = vector.broadcast %4 : vector<1x4xf32> to vector<16x4xf32>
    %6 = arith.addf %3, %5 : vector<16x4xf32>
    %cst_5 = arith.constant dense<0xFF800000> : vector<16xf32>
    %7 = vector.multi_reduction <maximumf>, %6, %cst_5 [1] : vector<16x4xf32> to vector<16xf32>
    %8 = vector.shape_cast %7 : vector<16xf32> to vector<16x1xf32>
    %9 = vector.broadcast %8 : vector<16x1xf32> to vector<16x4xf32>
    %10 = arith.subf %6, %9 : vector<16x4xf32>
    %11 = math.exp %10 : vector<16x4xf32>
    %cst_6 = arith.constant dense<0.000000e+00> : vector<16xf32>
    %12 = vector.multi_reduction <add>, %11, %cst_6 [1] : vector<16x4xf32> to vector<16xf32>
    %13 = vector.shape_cast %12 : vector<16xf32> to vector<16x1xf32>
    %14 = vector.broadcast %13 : vector<16x1xf32> to vector<16x4xf32>
    %15 = arith.divf %11, %14 : vector<16x4xf32>
    %cst_7 = arith.constant dense<0xFF800000> : vector<16xf32>
    %16 = vector.multi_reduction <maximumf>, %15, %cst_7 [1] : vector<16x4xf32> to vector<16xf32>
    %17 = vector.shape_cast %16 : vector<16xf32> to vector<16x1xf32>
    %18 = tpu.iota {dimensions = array<i32: 1>} : vector<16x4xi32>
    %19 = vector.broadcast %17 : vector<16x1xf32> to vector<16x4xf32>
    %20 = arith.cmpf oge, %15, %19 : vector<16x4xf32>
    %c4_i32 = arith.constant 4 : i32
    %21 = vector.broadcast %c4_i32 : i32 to vector<16x4xi32>
    %22 = arith.select %20, %18, %21 : vector<16x4xi1>, vector<16x4xi32>
    %cst_8 = arith.constant dense<2147483647> : vector<16xi32>
    %23 = vector.multi_reduction <minsi>, %22, %cst_8 [1] : vector<16x4xi32> to vector<16xi32>
    %24 = vector.shape_cast %23 : vector<16xi32> to vector<16x1xi32>
    %c0_9 = arith.constant 0 : index
    %c0_10 = arith.constant 0 : index
    %25 = vector.load %arg4[%c0_9, %c0_10] : memref<16x4xf32, #tpu.memory_space<vmem>>, vector<16x4xf32>
    tpu.vector_store %arg4[%c0_9, %c0_10], %15 {strides = array<i32>} : memref<16x4xf32, #tpu.memory_space<vmem>>, vector<16x4xf32>,
    %c0_11 = arith.constant 0 : index
    %c0_12 = arith.constant 0 : index
    %26 = vector.load %arg5[%c0_11, %c0_12] : memref<16x1xi32, #tpu.memory_space<vmem>>, vector<16x1xi32>
    tpu.vector_store %arg5[%c0_11, %c0_12], %24 {strides = array<i32>} : memref<16x1xi32, #tpu.memory_space<vmem>>, vector<16x1xi32>,
    %c0_13 = arith.constant 0 : index
    %c0_14 = arith.constant 0 : index
    %27 = vector.load %arg6[%c0_13, %c0_14] : memref<16x1xf32, #tpu.memory_space<vmem>>, vector<16x1xf32>
    tpu.vector_store %arg6[%c0_13, %c0_14], %17 {strides = array<i32>} : memref<16x1xf32, #tpu.memory_space<vmem>>, vector<16x1xf32>,
    return
  }
  func.func @transform_0(%arg0: i32) -> (i32, i32) {
    %c0_i32 = arith.constant 0 : i32
    %c0_i32_0 = arith.constant 0 : i32
    return %arg0, %c0_i32 : i32, i32
  }
  func.func @transform_1(%arg0: i32) -> (i32, i32) {
    %c0_i32 = arith.constant 0 : i32
    %c0_i32_0 = arith.constant 0 : i32
    %c0_i32_1 = arith.constant 0 : i32
    return %c0_i32, %c0_i32_0 : i32, i32
  }
  func.func @transform_2(%arg0: i32) -> (i32, i32) {
    %c0_i32 = arith.constant 0 : i32
    %c0_i32_0 = arith.constant 0 : i32
    %c0_i32_1 = arith.constant 0 : i32
    return %c0_i32, %c0_i32_0 : i32, i32
  }
  func.func @transform_3(%arg0: i32) -> (i32, i32) {
    %c0_i32 = arith.constant 0 : i32
    %c0_i32_0 = arith.constant 0 : i32
    return %arg0, %c0_i32 : i32, i32
  }
  func.func @transform_4(%arg0: i32) -> (i32, i32) {
    %c0_i32 = arith.constant 0 : i32
    %c0_i32_0 = arith.constant 0 : i32
    return %arg0, %c0_i32 : i32, i32
  }
  func.func @transform_5(%arg0: i32) -> (i32, i32) {
    %c0_i32 = arith.constant 0 : i32
    %c0_i32_0 = arith.constant 0 : i32
    return %arg0, %c0_i32 : i32, i32
  }
}

module attributes {stable_mosaic.version = 11 : i64} {
  func.func @_moe_ffn_ln_kernel(%arg0: i32, %arg1: i32, %arg2: i32, %arg3: memref<16x32xf32, #tpu.memory_space<vmem>>, %arg4: memref<1x32x64xbf16, #tpu.memory_space<vmem>>, %arg5: memref<1x1x64xf32, #tpu.memory_space<vmem>>, %arg6: memref<1x64x32xbf16, #tpu.memory_space<vmem>>, %arg7: memref<1x1x32xf32, #tpu.memory_space<vmem>>, %arg8: memref<16x1xi32, #tpu.memory_space<vmem>>, %arg9: memref<16x1xf32, #tpu.memory_space<vmem>>, %arg10: memref<1x32xf32, #tpu.memory_space<vmem>>, %arg11: memref<1x32xf32, #tpu.memory_space<vmem>>, %arg12: memref<16x32xf32, #tpu.memory_space<vmem>>, %arg13: memref<16x32xf32, #tpu.memory_space<vmem>>) attributes {dimension_semantics = [#tpu.dimension_semantics<parallel>, #tpu.dimension_semantics<arbitrary>, #tpu.dimension_semantics<arbitrary>], iteration_bounds = array<i64: 1, 4, 1>, scalar_prefetch = 0 : i64, scratch_operands = 1 : i64, tpu.core_type = #tpu.core_type<tc>, window_params = [{transform_indices = @transform_0, window_bounds = array<i64: 16, 32>}, {transform_indices = @transform_1, window_bounds = array<i64: 1, 32, 64>}, {transform_indices = @transform_2, window_bounds = array<i64: 1, 1, 64>}, {transform_indices = @transform_3, window_bounds = array<i64: 1, 64, 32>}, {transform_indices = @transform_4, window_bounds = array<i64: 1, 1, 32>}, {transform_indices = @transform_5, window_bounds = array<i64: 16, 1>}, {transform_indices = @transform_6, window_bounds = array<i64: 16, 1>}, {pipeline_mode = #tpu.pipeline_mode<synchronous>, transform_indices = @transform_7, window_bounds = array<i64: 1, 32>}, {pipeline_mode = #tpu.pipeline_mode<synchronous>, transform_indices = @transform_8, window_bounds = array<i64: 1, 32>}, {transform_indices = @transform_9, window_bounds = array<i64: 16, 32>}]} {
    %c0_i32 = arith.constant 0 : i32
    %0 = arith.cmpi eq, %arg1, %c0_i32 : i32
    %c0_i32_0 = arith.constant 0 : i32
    %1 = arith.cmpi eq, %arg2, %c0_i32_0 : i32
    %2 = arith.andi %0, %1 : i1
    %3 = arith.extui %2 : i1 to i32
    %c0_i32_1 = arith.constant 0 : i32
    %4 = arith.cmpi ne, %3, %c0_i32_1 : i32
    scf.if %4 {
      %cst_27 = arith.constant 0.000000e+00 : f32
      %39 = vector.broadcast %cst_27 : f32 to vector<16x32xf32>
      %c0_28 = arith.constant 0 : index
      %c0_29 = arith.constant 0 : index
      %40 = vector.load %arg13[%c0_28, %c0_29] : memref<16x32xf32, #tpu.memory_space<vmem>>, vector<16x32xf32>
      tpu.vector_store %arg13[%c0_28, %c0_29], %39 {strides = array<i32>} : memref<16x32xf32, #tpu.memory_space<vmem>>, vector<16x32xf32>,
    } else {
    }
    %c0 = arith.constant 0 : index
    %c0_2 = arith.constant 0 : index
    %5 = vector.load %arg8[%c0, %c0_2] : memref<16x1xi32, #tpu.memory_space<vmem>>, vector<16x1xi32>
    %6 = vector.broadcast %arg1 : i32 to vector<16x1xi32>
    %7 = arith.cmpi eq, %5, %6 : vector<16x1xi32>
    %c0_3 = arith.constant 0 : index
    %c0_4 = arith.constant 0 : index
    %8 = vector.load %arg9[%c0_3, %c0_4] : memref<16x1xf32, #tpu.memory_space<vmem>>, vector<16x1xf32>
    %cst = arith.constant 0.000000e+00 : f32
    %9 = vector.broadcast %cst : f32 to vector<16x1xf32>
    %10 = arith.select %7, %8, %9 : vector<16x1xi1>, vector<16x1xf32>
    %c0_5 = arith.constant 0 : index
    %c0_6 = arith.constant 0 : index
    %11 = vector.load %arg3[%c0_5, %c0_6] : memref<16x32xf32, #tpu.memory_space<vmem>>, vector<16x32xf32>
    %12 = arith.truncf %11 : vector<16x32xf32> to vector<16x32xbf16>
    %c0_7 = arith.constant 0 : index
    %c0_8 = arith.constant 0 : index
    %c0_9 = arith.constant 0 : index
    %13 = vector.load %arg4[%c0_7, %c0_8, %c0_9] : memref<1x32x64xbf16, #tpu.memory_space<vmem>>, vector<1x32x64xbf16>
    %14 = vector.shape_cast %13 : vector<1x32x64xbf16> to vector<32x64xbf16>
    %cst_10 = arith.constant dense<0.000000e+00> : vector<16x64xf32>
    %15 = tpu.matmul %12, %14, %cst_10 {dimension_numbers = #tpu.dot_dimension_numbers<[1], [0], [0], [1], [0, 0, 1, 1], [], []>} : vector<16x32xbf16>, vector<32x64xbf16>, vector<16x64xf32> -> vector<16x64xf32>
    %c0_11 = arith.constant 0 : index
    %c0_12 = arith.constant 0 : index
    %c0_13 = arith.constant 0 : index
    %16 = vector.load %arg5[%c0_11, %c0_12, %c0_13] : memref<1x1x64xf32, #tpu.memory_space<vmem>>, vector<1x1x64xf32>
    %17 = vector.shape_cast %16 : vector<1x1x64xf32> to vector<1x64xf32>
    %18 = vector.broadcast %17 : vector<1x64xf32> to vector<16x64xf32>
    %19 = arith.addf %15, %18 : vector<16x64xf32>
    %cst_14 = arith.constant 0.000000e+00 : f32
    %20 = vector.broadcast %cst_14 : f32 to vector<16x64xf32>
    %21 = arith.maximumf %19, %20 : vector<16x64xf32>
    %22 = arith.truncf %21 : vector<16x64xf32> to vector<16x64xbf16>
    %c0_15 = arith.constant 0 : index
    %c0_16 = arith.constant 0 : index
    %c0_17 = arith.constant 0 : index
    %23 = vector.load %arg6[%c0_15, %c0_16, %c0_17] : memref<1x64x32xbf16, #tpu.memory_space<vmem>>, vector<1x64x32xbf16>
    %24 = vector.shape_cast %23 : vector<1x64x32xbf16> to vector<64x32xbf16>
    %cst_18 = arith.constant dense<0.000000e+00> : vector<16x32xf32>
    %25 = tpu.matmul %22, %24, %cst_18 {dimension_numbers = #tpu.dot_dimension_numbers<[1], [0], [0], [1], [0, 0, 1, 1], [], []>} : vector<16x64xbf16>, vector<64x32xbf16>, vector<16x32xf32> -> vector<16x32xf32>
    %c0_i32_19 = arith.constant 0 : i32
    %26 = arith.cmpi eq, %arg2, %c0_i32_19 : i32
    %27 = arith.extui %26 : i1 to i32
    %c0_i32_20 = arith.constant 0 : i32
    %28 = arith.cmpi ne, %27, %c0_i32_20 : i32
    scf.if %28 {
      %c0_27 = arith.constant 0 : index
      %c0_28 = arith.constant 0 : index
      %39 = vector.load %arg13[%c0_27, %c0_28] : memref<16x32xf32, #tpu.memory_space<vmem>>, vector<16x32xf32>
      %c0_29 = arith.constant 0 : index
      %c0_30 = arith.constant 0 : index
      %c0_31 = arith.constant 0 : index
      %40 = vector.load %arg7[%c0_29, %c0_30, %c0_31] : memref<1x1x32xf32, #tpu.memory_space<vmem>>, vector<1x1x32xf32>
      %41 = vector.shape_cast %40 : vector<1x1x32xf32> to vector<1x32xf32>
      %42 = vector.broadcast %10 : vector<16x1xf32> to vector<16x32xf32>
      %43 = vector.broadcast %41 : vector<1x32xf32> to vector<16x32xf32>
      %44 = arith.mulf %42, %43 : vector<16x32xf32>
      %45 = arith.addf %39, %44 : vector<16x32xf32>
      %c0_32 = arith.constant 0 : index
      %c0_33 = arith.constant 0 : index
      %46 = vector.load %arg13[%c0_32, %c0_33] : memref<16x32xf32, #tpu.memory_space<vmem>>, vector<16x32xf32>
      tpu.vector_store %arg13[%c0_32, %c0_33], %45 {strides = array<i32>} : memref<16x32xf32, #tpu.memory_space<vmem>>, vector<16x32xf32>,
    } else {
    }
    %c0_21 = arith.constant 0 : index
    %c0_22 = arith.constant 0 : index
    %29 = vector.load %arg13[%c0_21, %c0_22] : memref<16x32xf32, #tpu.memory_space<vmem>>, vector<16x32xf32>
    %30 = vector.broadcast %10 : vector<16x1xf32> to vector<16x32xf32>
    %31 = arith.mulf %30, %25 : vector<16x32xf32>
    %32 = arith.addf %29, %31 : vector<16x32xf32>
    %c0_23 = arith.constant 0 : index
    %c0_24 = arith.constant 0 : index
    %33 = vector.load %arg13[%c0_23, %c0_24] : memref<16x32xf32, #tpu.memory_space<vmem>>, vector<16x32xf32>
    tpu.vector_store %arg13[%c0_23, %c0_24], %32 {strides = array<i32>} : memref<16x32xf32, #tpu.memory_space<vmem>>, vector<16x32xf32>,
    %c3_i32 = arith.constant 3 : i32
    %34 = arith.cmpi eq, %arg1, %c3_i32 : i32
    %c0_i32_25 = arith.constant 0 : i32
    %35 = arith.cmpi eq, %arg2, %c0_i32_25 : i32
    %36 = arith.andi %34, %35 : i1
    %37 = arith.extui %36 : i1 to i32
    %c0_i32_26 = arith.constant 0 : i32
    %38 = arith.cmpi ne, %37, %c0_i32_26 : i32
    scf.if %38 {
      %c0_27 = arith.constant 0 : index
      %c0_28 = arith.constant 0 : index
      %39 = vector.load %arg3[%c0_27, %c0_28] : memref<16x32xf32, #tpu.memory_space<vmem>>, vector<16x32xf32>
      %c0_29 = arith.constant 0 : index
      %c0_30 = arith.constant 0 : index
      %40 = vector.load %arg13[%c0_29, %c0_30] : memref<16x32xf32, #tpu.memory_space<vmem>>, vector<16x32xf32>
      %41 = arith.addf %39, %40 : vector<16x32xf32>
      %cst_31 = arith.constant dense<0.000000e+00> : vector<16xf32>
      %42 = vector.multi_reduction <add>, %41, %cst_31 [1] : vector<16x32xf32> to vector<16xf32>
      %43 = vector.shape_cast %42 : vector<16xf32> to vector<16x1xf32>
      %cst_32 = arith.constant 3.200000e+01 : f32
      %44 = vector.broadcast %cst_32 : f32 to vector<16x1xf32>
      %45 = arith.divf %43, %44 : vector<16x1xf32>
      %46 = vector.broadcast %45 : vector<16x1xf32> to vector<16x32xf32>
      %47 = arith.subf %41, %46 : vector<16x32xf32>
      %48 = arith.mulf %47, %47 : vector<16x32xf32>
      %cst_33 = arith.constant dense<0.000000e+00> : vector<16xf32>
      %49 = vector.multi_reduction <add>, %48, %cst_33 [1] : vector<16x32xf32> to vector<16xf32>
      %50 = vector.shape_cast %49 : vector<16xf32> to vector<16x1xf32>
      %cst_34 = arith.constant 3.200000e+01 : f32
      %51 = vector.broadcast %cst_34 : f32 to vector<16x1xf32>
      %52 = arith.divf %50, %51 : vector<16x1xf32>
      %53 = vector.broadcast %45 : vector<16x1xf32> to vector<16x32xf32>
      %54 = arith.subf %41, %53 : vector<16x32xf32>
      %cst_35 = arith.constant 9.99999974E-6 : f32
      %55 = vector.broadcast %cst_35 : f32 to vector<16x1xf32>
      %56 = arith.addf %52, %55 : vector<16x1xf32>
      %57 = math.rsqrt %56 : vector<16x1xf32>
      %58 = vector.broadcast %57 : vector<16x1xf32> to vector<16x32xf32>
      %59 = arith.mulf %54, %58 : vector<16x32xf32>
      %c0_36 = arith.constant 0 : index
      %c0_37 = arith.constant 0 : index
      %60 = vector.load %arg10[%c0_36, %c0_37] : memref<1x32xf32, #tpu.memory_space<vmem>>, vector<1x32xf32>
      %61 = vector.broadcast %60 : vector<1x32xf32> to vector<16x32xf32>
      %62 = arith.mulf %59, %61 : vector<16x32xf32>
      %c0_38 = arith.constant 0 : index
      %c0_39 = arith.constant 0 : index
      %63 = vector.load %arg11[%c0_38, %c0_39] : memref<1x32xf32, #tpu.memory_space<vmem>>, vector<1x32xf32>
      %64 = vector.broadcast %63 : vector<1x32xf32> to vector<16x32xf32>
      %65 = arith.addf %62, %64 : vector<16x32xf32>
      %c0_40 = arith.constant 0 : index
      %c0_41 = arith.constant 0 : index
      %66 = vector.load %arg12[%c0_40, %c0_41] : memref<16x32xf32, #tpu.memory_space<vmem>>, vector<16x32xf32>
      tpu.vector_store %arg12[%c0_40, %c0_41], %65 {strides = array<i32>} : memref<16x32xf32, #tpu.memory_space<vmem>>, vector<16x32xf32>,
    } else {
    }
    return
  }
  func.func @transform_0(%arg0: i32, %arg1: i32, %arg2: i32) -> (i32, i32) {
    %c0_i32 = arith.constant 0 : i32
    %c0_i32_0 = arith.constant 0 : i32
    return %arg0, %c0_i32 : i32, i32
  }
  func.func @transform_1(%arg0: i32, %arg1: i32, %arg2: i32) -> (i32, i32, i32) {
    %c0_i32 = arith.constant 0 : i32
    %c0_i32_0 = arith.constant 0 : i32
    return %arg1, %c0_i32, %arg2 : i32, i32, i32
  }
  func.func @transform_2(%arg0: i32, %arg1: i32, %arg2: i32) -> (i32, i32, i32) {
    %c0_i32 = arith.constant 0 : i32
    %c0_i32_0 = arith.constant 0 : i32
    return %arg1, %c0_i32, %arg2 : i32, i32, i32
  }
  func.func @transform_3(%arg0: i32, %arg1: i32, %arg2: i32) -> (i32, i32, i32) {
    %c0_i32 = arith.constant 0 : i32
    %c0_i32_0 = arith.constant 0 : i32
    return %arg1, %arg2, %c0_i32 : i32, i32, i32
  }
  func.func @transform_4(%arg0: i32, %arg1: i32, %arg2: i32) -> (i32, i32, i32) {
    %c0_i32 = arith.constant 0 : i32
    %c0_i32_0 = arith.constant 0 : i32
    %c0_i32_1 = arith.constant 0 : i32
    return %arg1, %c0_i32, %c0_i32_0 : i32, i32, i32
  }
  func.func @transform_5(%arg0: i32, %arg1: i32, %arg2: i32) -> (i32, i32) {
    %c0_i32 = arith.constant 0 : i32
    %c0_i32_0 = arith.constant 0 : i32
    return %arg0, %c0_i32 : i32, i32
  }
  func.func @transform_6(%arg0: i32, %arg1: i32, %arg2: i32) -> (i32, i32) {
    %c0_i32 = arith.constant 0 : i32
    %c0_i32_0 = arith.constant 0 : i32
    return %arg0, %c0_i32 : i32, i32
  }
  func.func @transform_7(%arg0: i32, %arg1: i32, %arg2: i32) -> (i32, i32) {
    %c0_i32 = arith.constant 0 : i32
    %c0_i32_0 = arith.constant 0 : i32
    %c0_i32_1 = arith.constant 0 : i32
    return %c0_i32, %c0_i32_0 : i32, i32
  }
  func.func @transform_8(%arg0: i32, %arg1: i32, %arg2: i32) -> (i32, i32) {
    %c0_i32 = arith.constant 0 : i32
    %c0_i32_0 = arith.constant 0 : i32
    %c0_i32_1 = arith.constant 0 : i32
    return %c0_i32, %c0_i32_0 : i32, i32
  }
  func.func @transform_9(%arg0: i32, %arg1: i32, %arg2: i32) -> (i32, i32) {
    %c0_i32 = arith.constant 0 : i32
    %c0_i32_0 = arith.constant 0 : i32
    return %arg0, %c0_i32 : i32, i32
  }
}

</mosaic_0001>

<bundles_post_ra>
// kernel: switch_decoder_layer.11
= control target key start
LH: loop header
LB: loop body
LE: loop exit
PB: predicated region body
PF: predicated region fallthrough
CT: control target
= control target key end

     0   :  { %vm51_vm0 = vcmask 261120   ;;  %v168_v14 = vmov 32.0   ;;  %s241_s1 = inlined_call_operand.vmem [shape: bf16[32,32], index: 1, kind: input, shape index: {}]   ;;  %s242_s2 = inlined_call_operand.vmem [shape: f32[1,32], index: 2, kind: input, shape index: {}]   ;;  %s243_s0 = inlined_call_operand.vmem [shape: bf16[16,32], index: 0, kind: input, shape index: {}]   ;;  %s244_s3 = inlined_call_operand.vmem [shape: f32[16,32], index: 3, kind: input, shape index: {}]   ;;  %s245_s4 = inlined_call_operand.vmem [shape: f32[1,32], index: 4, kind: input, shape index: {}]   ;;  %s246_s5 = inlined_call_operand.vmem [shape: f32[1,32], index: 5, kind: input, shape index: {}]   ;;  %s247_s6 = inlined_call_operand.vmem [shape: f32[16,32], index: 6, kind: output, shape index: {}]  }
   0x1   :  { %v157_v0 = vld [vmem:[%s241_s1 + $0x8] sm:$0xff]  ;;  %v156_v1 = vld [vmem:[%s241_s1] sm:$0xff]  ;;  %162 = vrcp.f32 %v168_v14 }
   0x2   :  { %61 = vmatpush.bf16.msra.mxu0 %v157_v0  ;;  %v155_v2 = vld [vmem:[%s243_s0] sm:$0xff]  ;;  %v70_v10 = vld [vmem:[%s244_s3 + $0x8] sm:$0xff] }
   0x3   :  { %v159_v3 = vld [vmem:[%s242_s2] ss:$0 sm:$0xff] }
   0x4   :  { %v69_v5 = vld [vmem:[%s244_s3] sm:$0xff] }
   0x5   :  { %v160_v45 = vld [vmem:[%s245_s4] ss:$0 sm:$0xff] }
   0x6   :  { %62 = vmatpush.bf16.msra.mxu0 %v156_v1  ;;  %v161_v48 = vld [vmem:[%s246_s5] ss:$0 sm:$0xff] }
   0x7   :  { %v163_v15 = vpop.eup %162 }
   0x8   :  { %v80_v16 = vmul.f32 32.0, %v163_v15  ;;  %vm84_vm1 = vweird.f32 %v163_v15 }
   0x9   :  { %154 = vmatmul.msk.bf16.vlgmr.msra.gmra.mxu0 %vm51_vm0, %v155_v2 }
   0xa   :  { %v81_v17 = vsub.f32 1.0, %v80_v16 }
   0xc   :  { %v82_v18 = vmul.f32 %v163_v15, %v81_v17 }
   0xe   :  { %v83_v19 = vadd.f32 %v163_v15, %v82_v18 }
  0x10   :  { %v85_v20 = vsel %vm84_vm1, %v163_v15, %v83_v19 }
  0x86   :  { %v64_v4 = vpop.f32.mrf.mxu0 }
  0x87   :  { %v65_v6 = vadd.f32 %v159_v3, %v64_v4 }
  0x89   :  { %v71_v7 = vadd.f32 %v69_v5, %v65_v6 }
  0x8b   :  { %v73_v8 = vsel %vm51_vm0, %v71_v7, 0.0 }
  0x8c   :  { %74 = vadd.xlane.f32.xlu0 %v73_v8 }
  0x8e   :  { %v66_v9 = vpop.f32.mrf.mxu0 }
  0x8f   :  { %v67_v11 = vadd.f32 %v159_v3, %v66_v9 }
  0x91   :  { %v72_v12 = vadd.f32 %v70_v10, %v67_v11 }
  0x93   :  { %v76_v13 = vsel %vm51_vm0, %v72_v12, 0.0 }
  0x94   :  { %77 = vadd.xlane.f32.xlu0 %v76_v13 }
  0xff   :  { %v75_v21 = vpop.xlane.xlu0 %74 }
 0x100   :  { %v86_v22 = vmul.f32 %v85_v20, %v75_v21 }
 0x102   :  { %v88_v23 = vsub.f32 %v71_v7, %v86_v22 }
 0x104   :  { %v90_v24 = vmul.f32 %v88_v23, %v88_v23 }
 0x106   :  { %v92_v25 = vsel %vm51_vm0, %v90_v24, 0.0 }
 0x107   :  { %93 = vadd.xlane.f32.xlu1 %v92_v25  ;;  %v78_v26 = vpop.xlane.xlu0 %77 }
 0x108   :  { %v87_v27 = vmul.f32 %v85_v20, %v78_v26 }
 0x10a   :  { %v89_v28 = vsub.f32 %v72_v12, %v87_v27 }
 0x10c   :  { %v91_v29 = vmul.f32 %v89_v28, %v89_v28 }
 0x10e   :  { %v95_v30 = vsel %vm51_vm0, %v91_v29, 0.0 }
 0x10f   :  { %96 = vadd.xlane.f32.xlu1 %v95_v30 }
 0x17a   :  { %v94_v31 = vpop.xlane.xlu1 %93 }
 0x17b   :  { %v98_v32 = vmul.f32 %v94_v31, %v85_v20 }
 0x17d   :  { %v100_v33 = vadd.f32 1e-05, %v98_v32 }
 0x17f   :  { %164 = vrsqrt.f32 %v100_v33  ;;  %vm108_vm3 = vweird.f32 %v100_v33 }
 0x182   :  { %v97_v34 = vpop.xlane.xlu1 %96 }
 0x183   :  { %v99_v35 = vmul.f32 %v97_v34, %v85_v20 }
 0x185   :  { %v165_v36 = vpop.eup %164  ;;  %v101_v37 = vadd.f32 1e-05, %v99_v35 }
 0x186   :  { %v103_v38 = vmul.f32 %v165_v36, %v100_v33  ;;  %vm109_vm2 = vweird.f32 %v165_v36 }
 0x187   :  { %166 = vrsqrt.f32 %v101_v37  ;;  %vm110_vm4 = vmor %vm108_vm3, %vm109_vm2  ;;  %vm118_vm6 = vweird.f32 %v101_v37 }
 0x188   :  { %v104_v39 = vmul.f32 %v165_v36, %v103_v38 }
 0x18a   :  { %v105_v40 = vmul.f32 0.5, %v104_v39 }
 0x18c   :  { %v106_v41 = vsub.f32 1.5, %v105_v40 }
 0x18d   :  { %v167_v42 = vpop.eup %166 }
 0x18e   :  { %v107_v43 = vmul.f32 %v165_v36, %v106_v41  ;;  %v113_v44 = vmul.f32 %v167_v42, %v101_v37  ;;  %vm119_vm5 = vweird.f32 %v167_v42 }
 0x18f   :  { %vm120_vm7 = vmor %vm118_vm6, %vm119_vm5 }
 0x190   :  { %v111_v46 = vsel %vm110_vm4, %v165_v36, %v107_v43  ;;  %v114_v47 = vmul.f32 %v167_v42, %v113_v44 }
 0x191   :  { %v122_v49 = vmul.f32 %v111_v46, %v88_v23 }
 0x192   :  { %v115_v50 = vmul.f32 0.5, %v114_v47 }
 0x193   :  { %v128_v51 = vmul.f32 %v160_v45, %v122_v49 }
 0x194   :  { %v116_v52 = vsub.f32 1.5, %v115_v50 }
 0x195   :  { %v134_v53 = vadd.f32 %v161_v48, %v128_v51 }
 0x196   :  { %v117_v54 = vmul.f32 %v167_v42, %v116_v52 }
 0x197   :  { %136 = vst.msk [vmem:[%s247_s6] sm:$0xff] %vm51_vm0, %v134_v53 }
 0x198   :  { %v121_v55 = vsel %vm120_vm7, %v167_v42, %v117_v54 }
 0x199   :  { %v123_v56 = vmul.f32 %v121_v55, %v89_v28 }
 0x19b   :  { %v129_v57 = vmul.f32 %v160_v45, %v123_v56 }
 0x19d   :  { %v135_v58 = vadd.f32 %v161_v48, %v129_v57 }
 0x19f   :  { %137 = vst.msk [vmem:[%s247_s6 + $0x8] sm:$0xff] %vm51_vm0, %v135_v58 }

// kernel: switch_decoder_layer.12
= control target key start
LH: loop header
LB: loop body
LE: loop exit
PB: predicated region body
PF: predicated region fallthrough
CT: control target
= control target key end

     0   :  { %vm38_vm0 = vcmask 261120   ;;  %vm58_vm1 = vcmask 257024   ;;  %s118_s1 = inlined_call_operand.vmem [shape: bf16[32,32], index: 1, kind: input, shape index: {}]   ;;  %s119_s0 = inlined_call_operand.vmem [shape: f32[16,32], index: 0, kind: input, shape index: {}]   ;;  %s120_s2 = inlined_call_operand.vmem [shape: f32[1,32], index: 2, kind: input, shape index: {}]   ;;  %s121_s3 = inlined_call_operand.vmem [shape: bf16[16,32], index: 3, kind: output, shape index: {}]  }
   0x1   :  { %v75_v0 = vld [vmem:[%s118_s1 + $0x8] sm:$0xff]  ;;  %v74_v1 = vld [vmem:[%s118_s1] sm:$0xff] }
   0x2   :  { %48 = vmatpush.bf16.msra.mxu0 %v75_v0  ;;  %v15_v2 = vld [vmem:[%s119_s0] sm:$0xff]  ;;  %v16_v3 = vld [vmem:[%s119_s0 + $0x8] sm:$0xff] }
   0x3   :  { %v17_v4 = vpack.c.bf16 %v16_v3, %v15_v2  ;;  %v76_v5 = vld [vmem:[%s120_s2] ss:$0 sm:$0xff] }
   0x6   :  { %49 = vmatpush.bf16.msra.mxu0 %v74_v1 }
   0x9   :  { %73 = vmatmul.msk.bf16.vlgmr.msra.gmra.mxu0 %vm38_vm0, %v17_v4 }
  0x86   :  { %v51_v6 = vpop.f32.mrf.mxu0 }
  0x87   :  { %v52_v7 = vadd.f32 %v76_v5, %v51_v6 }
  0x89   :  { %v56_v8 = vpack.c.bf16 %v52_v7, %v52_v7 }
  0x8b   :  { %59 = vst.msk [vmem:[%s121_s3] sm:$0xf] %vm58_vm1, %v56_v8 }
  0x8e   :  { %v53_v9 = vpop.f32.mrf.mxu0 }
  0x8f   :  { %v54_v10 = vadd.f32 %v76_v5, %v53_v9 }
  0x91   :  { %v57_v11 = vpack.c.bf16 %v54_v10, %v54_v10 }
  0x93   :  { %60 = vst.msk [vmem:[%s121_s3 + $0x4] sm:$0xf] %vm58_vm1, %v57_v11 }

// kernel: switch_decoder_layer.9
= control target key start
LH: loop header
LB: loop body
LE: loop exit
PB: predicated region body
PF: predicated region fallthrough
CT: control target
= control target key end

     0   :  { %vm38_vm0 = vcmask 261120   ;;  %vm58_vm1 = vcmask 781312   ;;  %s118_s1 = inlined_call_operand.vmem [shape: bf16[32,96], index: 1, kind: input, shape index: {}]   ;;  %s119_s0 = inlined_call_operand.vmem [shape: f32[16,32], index: 0, kind: input, shape index: {}]   ;;  %s120_s2 = inlined_call_operand.vmem [shape: f32[1,96], index: 2, kind: input, shape index: {}]   ;;  %s121_s3 = inlined_call_operand.vmem [shape: bf16[16,96], index: 3, kind: output, shape index: {}]  }
   0x1   :  { %v75_v0 = vld [vmem:[%s118_s1 + $0x8] sm:$0xff]  ;;  %v74_v1 = vld [vmem:[%s118_s1] sm:$0xff] }
   0x2   :  { %48 = vmatpush.bf16.msra.mxu0 %v75_v0  ;;  %v15_v2 = vld [vmem:[%s119_s0] sm:$0xff]  ;;  %v16_v3 = vld [vmem:[%s119_s0 + $0x8] sm:$0xff] }
   0x3   :  { %v17_v4 = vpack.c.bf16 %v16_v3, %v15_v2  ;;  %v76_v5 = vld [vmem:[%s120_s2] ss:$0 sm:$0xff] }
   0x6   :  { %49 = vmatpush.bf16.msra.mxu0 %v74_v1 }
   0x9   :  { %73 = vmatmul.msk.bf16.vlgmr.msra.gmra.mxu0 %vm38_vm0, %v17_v4 }
  0x86   :  { %v51_v6 = vpop.f32.mrf.mxu0 }
  0x87   :  { %v52_v7 = vadd.f32 %v76_v5, %v51_v6 }
  0x89   :  { %v56_v8 = vpack.c.bf16 %v52_v7, %v52_v7 }
  0x8b   :  { %59 = vst.msk [vmem:[%s121_s3] sm:$0xf] %vm58_vm1, %v56_v8 }
  0x8e   :  { %v53_v9 = vpop.f32.mrf.mxu0 }
  0x8f   :  { %v54_v10 = vadd.f32 %v76_v5, %v53_v9 }
  0x91   :  { %v57_v11 = vpack.c.bf16 %v54_v10, %v54_v10 }
  0x93   :  { %60 = vst.msk [vmem:[%s121_s3 + $0x4] sm:$0xf] %vm58_vm1, %v57_v11 }

// kernel: switch_decoder_layer.10
= control target key start
LH: loop header
LB: loop body
LE: loop exit
PB: predicated region body
PF: predicated region fallthrough
CT: control target
= control target key end

     0   :  { %s636_s9 = smov 0   ;;  %s719_s0 = inlined_call_operand.vmem [shape: bf16[2,8,96], index: 0, kind: input, shape index: {}]   ;;  %s720_s1 = inlined_call_operand.vmem [shape: s8[2,8,8], index: 1, kind: input, shape index: {}]   ;;  %s721_s2 = inlined_call_operand.vmem [shape: bf16[2,8,32], index: 2, kind: output, shape index: {}]  }
   0x1 LB: > { %s541_s10 = sadd.s32 4294967295, %s604_s9   ;;  %p545_p0 = scmp.ge.s32.totalorder %s604_s9, 1  ;;  %s604_s9 = sphi %s636_s9, %s12_s9  }
   0x2   : > { %p120_p1 = scmp.lt.s32.totalorder %s604_s9, 3 }
   0x4   : > { %p121_p2 = pnand %p545_p0, %p120_p1 }
   0x5   : > { %p144_p3 = scmp.lt.s32.totalorder (!%p121_p2), %s541_s10, 1  ;;  %s606_s15 = smov (!%p121_p2), 96  }
   0x6   : > { %124 = sbr.rel (%p121_p2) target bundleno = 1185 (0x4a1), region = 28  ;;  %s607_s16 = smov (!%p121_p2), 88  }
   0x7   : > { %s608_s17 = smov (!%p121_p2), 120   ;;  %s610_s22 = smov (!%p121_p2), 64  }
   0x8   : > { %s611_s23 = smov (!%p121_p2), 80   ;;  %s612_s24 = smov (!%p121_p2), 72  }
   0x9   : > { %s613_s25 = smov (!%p121_p2), 112   ;;  %s614_s26 = smov (!%p121_p2), 104  }
   0xa   : > { %s615_s27 = smov (!%p121_p2), 56   ;;  %s616_s3 = smov (!%p121_p2), 40  }
   0xb   : > { %s725_s10 = smov (!%p144_p3, %s541_s10), 1  ;;  %vm167_vm0 = vcmask 64512   ;;  %v609_v9 = vmov 0   ;;  %vm222_vm3 = vcmask 1043456   ;;  %vm240_vm8 = vcmask 60416   ;;  %s617_s4 = smov 48  }
   0xc   : > { %s546_s11 = sshll.u32 %s725_s10, 2  ;;  %s547_s18 = sshll.u32 %s725_s10, 1 }
   0xd   : > { %s147_s14 = scalar_lea.vmem %s719_s0, %s546_s11  ;;  %s151_s21 = scalar_lea.vmem %s720_s1, %s547_s18 }
   0xe   : > { %v159_v0 = vld [vmem:[%s147_s14] sm:$0xf]  ;;  %s693_s30 = scalar_lea.vmem %s721_s2, %s546_s11  ;;  %s618_s5 = smov 8  }
   0xf   : > { %v163_v1 = vunpack.c.l.b16 %v159_v0  ;;  %v160_v8 = vld [vmem:[%s151_s21] sm:$0x3]  ;;  %s619_s6 = smov 24   ;;  %s620_s7 = smov 16  }
  0x10   : > { %vm161_vm1 = vnez %v160_v8 }
  0x11   : > { %v652_v2 = vpack.c.b16 %v163_v1, %v163_v1  ;;  %v188_v10 = vsel %vm161_vm1, 16843009, %v609_v9 }
  0x12   : > { %v189_v11 = vunpack.c.0.s8 %v188_v10 }
  0x13   : > { %165 = vrot.lane.b32.xlu0 %v652_v2, %s606_s15  ;;  %244 = vrot.lane.b32.xlu1 %v652_v2, %s607_s16 }
  0x14   : > { %242 = vrot.lane.b32.xlu2 %v652_v2, %s608_s17  ;;  %vm665_vm2 = vcmp.ne.s32.totalorder %v189_v11, 0 }
  0x1c   : > { %217 = vrot.lane.b32.xlu2 %v652_v2, %s610_s22 }
  0x24   : > { %322 = vrot.lane.b32.xlu2 %v652_v2, %s611_s23 }
  0x2c   : > { %400 = vrot.lane.b32.xlu2 %v652_v2, %s612_s24 }
  0x34   : > { %320 = vrot.lane.b32.xlu2 %v652_v2, %s613_s25 }
  0x6e   : > { %v243_v7 = vpop.permute.xlu2 %242 }
  0x76   : > { %v218_v21 = vpop.permute.xlu2 %217 }
  0x77   : > { %v224_v22 = vsel %vm222_vm3, %v218_v21, 0 }
  0x78   : > { %233 = vmatpush.bf16.msra.mxu1 %v224_v22 }
  0x7e   : > { %v323_v27 = vpop.permute.xlu2 %322 }
  0x7f   : > { %v328_v28 = vsel %vm167_vm0, %v323_v27, 0 }
  0x80   : > { %337 = vmatpush.bf16.xpose.msrb.mxu1 %v328_v28 }
  0x85   : > { %v166_v3 = vpop.permute.xlu0 %165  ;;  %v245_v5 = vpop.permute.xlu1 %244 }
  0x86   : > { %v172_v4 = vsel %vm167_vm0, %v166_v3, 0  ;;  %v250_v6 = vsel %vm167_vm0, %v245_v5, 0  ;;  %v401_v32 = vpop.permute.xlu2 %400 }
  0x87   : > { %181 = vmatpush.bf16.xpose.msra.mxu0 %v172_v4  ;;  %259 = vmatpush.bf16.xpose.msra.mxu2 %v250_v6  ;;  %v406_v33 = vsel %vm167_vm0, %v401_v32, 0 }
  0x8e   : > { %549 = vmatmul.msk.bf16.vlgmr.msra.gmra.mxu0 %vm167_vm0, %v159_v0  ;;  %551 = vmatmul.msk.bf16.vlgmr.msra.gmra.mxu2 %vm167_vm0, %v243_v7  ;;  %v321_v48 = vpop.permute.xlu2 %320 }
  0x8f   : > { %415 = vmatpush.bf16.xpose.msrb.mxu0 %v406_v33 }
 0x10b   : > { %v183_v12 = vpop.f32.mrf.mxu0 }
 0x10c   : > { %v187_v14 = vmul.f32 0.35355338, %v183_v12 }
 0x10e   : > { %v191_v15 = vsel %vm665_vm2, %v187_v14, -1e+30 }
 0x10f   : > { %v192_v16 = vsel %vm167_vm0, %v191_v15, -inf }
 0x110   : > { %193 = vmax.xlane.f32.xlu0 %v192_v16 }
 0x111   : > { %v261_v25 = vpop.f32.mrf.mxu2 }
 0x112   : > { %v265_v26 = vmul.f32 0.35355338, %v261_v25 }
 0x113   : > { %v185_v17 = vpop.f32.mrf.mxu0 }
 0x114   : > { %v266_v29 = vsel %vm665_vm2, %v265_v26, -1e+30 }
 0x115   : > { %v267_v30 = vsel %vm167_vm0, %v266_v29, -inf }
 0x116   : > { %268 = vmax.xlane.f32.xlu2 %v267_v30 }
 0x119   : > { %v263_v31 = vpop.f32.mrf.mxu2 }
 0x12e   : > { %292 = vrot.lane.b32.xlu2 %v652_v2, %s615_s27 }
 0x183   : > { %v194_v18 = vpop.xlane.xlu0 %193 }
 0x184   : > { %v195_v19 = vsub.f32 %v191_v15, %v194_v18 }
 0x186   : > { %v196_v20 = vmul.f32 1.442695, %v195_v19 }
 0x188   : > { %582 = vpow2.f32 %v196_v20 }
 0x189   : > { %v269_v49 = vpop.xlane.xlu2 %268 }
 0x18a   : > { %v270_v50 = vsub.f32 %v266_v29, %v269_v49 }
 0x18c   : > { %v271_v53 = vmul.f32 1.442695, %v270_v50 }
 0x18e   : > { %v583_v23 = vpop.eup %582 }
 0x18f   : > { %v198_v24 = vsel %vm167_vm0, %v583_v23, 0.0 }
 0x190   : > { %199 = vadd.xlane.f32.xlu1 %v198_v24 }
 0x191   : > { %v293_v4 = vpop.permute.xlu2 %292 }
 0x192   : > { %v298_v5 = vsel %vm222_vm3, %v293_v4, 0 }
 0x193   : > { %307 = vmatpush.bf16.msra.mxu3 %v298_v5 }
 0x1a9   : > { %398 = vrot.lane.b32.xlu1 %v652_v2, %s614_s26 }
 0x203   : > { %v200_v34 = vpop.xlane.xlu1 %199 }
 0x204   : > { %584 = vrcp.f32 %v200_v34  ;;  %v212_v38 = vand.u32 2147483648, %v200_v34  ;;  %v210_v40 = vand.u32 2147483647, %v200_v34  ;;  %vm206_vm5 = vweird.f32 %v200_v34 }
 0x205   : > { %586 = vpow2.f32 %v271_v53 }
 0x206   : > { %v213_v42 = vor.u32 1.1754944e-38, %v212_v38  ;;  %vm211_vm7 = vcmp.eq.f32.partialorder %v210_v40, 8.507059e+37 }
 0x20a   : > { %v585_v35 = vpop.eup %584 }
 0x20b   : > { %v202_v36 = vmul.f32 %v585_v35, %v200_v34  ;;  %vm207_vm4 = vweird.f32 %v585_v35  ;;  %v587_v60 = vpop.eup %586 }
 0x20c   : > { %vm208_vm6 = vmor %vm206_vm5, %vm207_vm4  ;;  %v273_v61 = vsel %vm167_vm0, %v587_v60, 0.0 }
 0x20d   : > { %v203_v37 = vsub.f32 1.0, %v202_v36 }
 0x20f   : > { %v204_v39 = vmul.f32 %v585_v35, %v203_v37 }
 0x211   : > { %v205_v41 = vadd.f32 %v585_v35, %v204_v39 }
 0x213   : > { %v209_v43 = vsel %vm208_vm6, %v585_v35, %v205_v41 }
 0x214   : > { %v214_v44 = vsel %vm211_vm7, %v213_v42, %v209_v43  ;;  %vm318_vm7 = vcmask 126016  }
 0x215   : > { %v215_v45 = vmul.f32 %v583_v23, %v214_v44 }
 0x217   : > { %v216_v46 = vpack.c.bf16 %v215_v45, %v215_v45 }
 0x219   : > { %550 = vmatmul.msk.bf16.vlgmr.msra.gmra.mxu1 %vm167_vm0, %v216_v46 }
 0x21b   : > { %v399_v47 = vpop.permute.xlu1 %398 }
 0x21c   : > { %555 = vmatmul.msk.bf16.vlgmr.msrb.gmra.mxu0 %vm167_vm0, %v399_v47 }
 0x229   : > { %553 = vmatmul.msk.bf16.vlgmr.msrb.gmra.mxu1 %vm167_vm0, %v321_v48 }
 0x296   : > { %v235_v51 = vpop.f32.mrf.mxu1 }
 0x297   : > { %v239_v52 = vpack.c.bf16 %v235_v51, %v235_v51 }
 0x299   : > { %241 = vst.msk [vmem:[%s693_s30] sm:$0xf] %vm240_vm8, %v239_v52  ;;  %v417_v54 = vpop.f32.mrf.mxu0 }
 0x29a   : > { %v421_v55 = vmul.f32 0.35355338, %v417_v54 }
 0x29c   : > { %v422_v56 = vsel %vm665_vm2, %v421_v55, -1e+30 }
 0x29d   : > { %v423_v57 = vsel %vm167_vm0, %v422_v56, -inf }
 0x29e   : > { %v237_v58 = vpop.f32.mrf.mxu1  ;;  %424 = vmax.xlane.f32.xlu0 %v423_v57 }
 0x2a1   : > { %v419_v59 = vpop.f32.mrf.mxu0 }
 0x2a6   : > { %v339_v62 = vpop.f32.mrf.mxu1  ;;  %274 = vadd.xlane.f32.xlu0 %v273_v61 }
 0x2a7   : > { %v343_v63 = vmul.f32 0.35355338, %v339_v62 }
 0x2a9   : > { %v344_v0 = vsel %vm665_vm2, %v343_v63, -1e+30 }
 0x2aa   : > { %v345_v1 = vsel %vm167_vm0, %v344_v0, -inf }
 0x2ab   : > { %346 = vmax.xlane.f32.xlu1 %v345_v1 }
 0x2ae   : > { %v341_v3 = vpop.f32.mrf.mxu1 }
 0x2c4   : > { %448 = vrot.lane.b32.xlu1 %v652_v2, %s616_s3 }
 0x311   : > { %v425_v6 = vpop.xlane.xlu0 %424 }
 0x312   : > { %v426_v7 = vsub.f32 %v422_v56, %v425_v6 }
 0x314   : > { %v427_v8 = vmul.f32 1.442695, %v426_v7 }
 0x316   : > { %588 = vpow2.f32 %v427_v8 }
 0x319   : > { %v275_v9 = vpop.xlane.xlu0 %274 }
 0x31a   : > { %590 = vrcp.f32 %v275_v9  ;;  %v287_v18 = vand.u32 2147483648, %v275_v9  ;;  %v285_v20 = vand.u32 2147483647, %v275_v9  ;;  %vm281_vm10 = vweird.f32 %v275_v9 }
 0x31c   : > { %v589_v10 = vpop.eup %588  ;;  %v288_v22 = vor.u32 1.1754944e-38, %v287_v18  ;;  %vm286_vm12 = vcmp.eq.f32.partialorder %v285_v20, 8.507059e+37 }
 0x31d   : > { %v429_v11 = vsel %vm167_vm0, %v589_v10, 0.0 }
 0x31e   : > { %v347_v12 = vpop.xlane.xlu1 %346  ;;  %430 = vadd.xlane.f32.xlu0 %v429_v11 }
 0x31f   : > { %v348_v13 = vsub.f32 %v344_v0, %v347_v12 }
 0x320   : > { %v591_v14 = vpop.eup %590 }
 0x321   : > { %v277_v15 = vmul.f32 %v591_v14, %v275_v9  ;;  %v349_v16 = vmul.f32 1.442695, %v348_v13  ;;  %vm282_vm9 = vweird.f32 %v591_v14 }
 0x322   : > { %vm283_vm11 = vmor %vm281_vm10, %vm282_vm9 }
 0x323   : > { %v278_v17 = vsub.f32 1.0, %v277_v15  ;;  %592 = vpow2.f32 %v349_v16 }
 0x325   : > { %v279_v19 = vmul.f32 %v591_v14, %v278_v17 }
 0x327   : > { %v280_v21 = vadd.f32 %v591_v14, %v279_v19 }
 0x329   : > { %v593_v23 = vpop.eup %592  ;;  %v284_v24 = vsel %vm283_vm11, %v591_v14, %v280_v21 }
 0x32a   : > { %v351_v25 = vsel %vm167_vm0, %v593_v23, 0.0  ;;  %v289_v26 = vsel %vm286_vm12, %v288_v22, %v284_v24 }
 0x32b   : > { %352 = vadd.xlane.f32.xlu0 %v351_v25  ;;  %v290_v27 = vmul.f32 %v587_v60, %v289_v26 }
 0x32d   : > { %v291_v28 = vpack.c.bf16 %v290_v27, %v290_v27 }
 0x32f   : > { %552 = vmatmul.msk.bf16.vlgmr.msra.gmra.mxu3 %vm167_vm0, %v291_v28 }
 0x336   : > { %v449_v29 = vpop.permute.xlu1 %448 }
 0x337   : > { %v454_v30 = vsel %vm222_vm3, %v449_v29, 0 }
 0x338   : > { %463 = vmatpush.bf16.msrb.mxu2 %v454_v30 }
 0x33f   : > { %370 = vrot.lane.b32.xlu0 %v652_v2, %s617_s4 }
 0x391   : > { %v431_v31 = vpop.xlane.xlu0 %430 }
 0x392   : > { %594 = vrcp.f32 %v431_v31  ;;  %v443_v35 = vand.u32 2147483648, %v431_v31  ;;  %v441_v37 = vand.u32 2147483647, %v431_v31  ;;  %vm437_vm14 = vweird.f32 %v431_v31 }
 0x394   : > { %v444_v40 = vor.u32 1.1754944e-38, %v443_v35  ;;  %vm442_vm1 = vcmp.eq.f32.partialorder %v441_v37, 8.507059e+37 }
 0x398   : > { %v595_v32 = vpop.eup %594 }
 0x399   : > { %v433_v33 = vmul.f32 %v595_v32, %v431_v31  ;;  %vm438_vm13 = vweird.f32 %v595_v32 }
 0x39a   : > { %vm439_vm15 = vmor %vm437_vm14, %vm438_vm13 }
 0x39b   : > { %v434_v34 = vsub.f32 1.0, %v433_v33 }
 0x39d   : > { %v435_v36 = vmul.f32 %v595_v32, %v434_v34 }
 0x39e   : > { %v353_v38 = vpop.xlane.xlu0 %352 }
 0x39f   : > { %v436_v39 = vadd.f32 %v595_v32, %v435_v36  ;;  %596 = vrcp.f32 %v353_v38  ;;  %v365_v47 = vand.u32 2147483648, %v353_v38  ;;  %v363_v49 = vand.u32 2147483647, %v353_v38 }
 0x3a0   : > { %vm359_vm4 = vweird.f32 %v353_v38 }
 0x3a1   : > { %v440_v2 = vsel %vm439_vm15, %v595_v32, %v436_v39  ;;  %v366_v51 = vor.u32 1.1754944e-38, %v365_v47  ;;  %vm364_vm6 = vcmp.eq.f32.partialorder %v363_v49, 8.507059e+37 }
 0x3a2   : > { %v445_v41 = vsel %vm442_vm1, %v444_v40, %v440_v2 }
 0x3a3   : > { %v446_v42 = vmul.f32 %v589_v10, %v445_v41 }
 0x3a5   : > { %v597_v43 = vpop.eup %596  ;;  %v447_v44 = vpack.c.bf16 %v446_v42, %v446_v42 }
 0x3a6   : > { %v355_v45 = vmul.f32 %v597_v43, %v353_v38  ;;  %vm360_vm2 = vweird.f32 %v597_v43 }
 0x3a7   : > { %556 = vmatmul.msk.bf16.vlgmr.msrb.gmra.mxu2 %vm167_vm0, %v447_v44  ;;  %vm361_vm5 = vmor %vm359_vm4, %vm360_vm2 }
 0x3a8   : > { %v356_v46 = vsub.f32 1.0, %v355_v45 }
 0x3aa   : > { %v357_v48 = vmul.f32 %v597_v43, %v356_v46 }
 0x3ac   : > { %v358_v50 = vadd.f32 %v597_v43, %v357_v48 }
 0x3ae   : > { %v362_v52 = vsel %vm361_vm5, %v597_v43, %v358_v50 }
 0x3af   : > { %v367_v53 = vsel %vm364_vm6, %v366_v51, %v362_v52 }
 0x3b0   : > { %v368_v54 = vmul.f32 %v593_v23, %v367_v53 }
 0x3b1   : > { %v371_v55 = vpop.permute.xlu0 %370 }
 0x3b2   : > { %v309_v56 = vpop.f32.mrf.mxu3  ;;  %v376_v57 = vsel %vm222_vm3, %v371_v55, 0  ;;  %v369_v59 = vpack.c.bf16 %v368_v54, %v368_v54  ;;  %vm396_vm3 = vcmask 191616  }
 0x3b3   : > { %v313_v58 = vpack.c.bf16 %v309_v56, %v309_v56  ;;  %385 = vmatpush.bf16.msrb.mxu3 %v376_v57 }
 0x3b5   : > { %315 = vrot.lane.b32.xlu0 %v313_v58, %s618_s5 }
 0x3b6   : > { %554 = vmatmul.msk.bf16.vlgmr.msrb.gmra.mxu3 %vm167_vm0, %v369_v59  ;;  %vm474_vm0 = vcmask 257216  }
 0x3ba   : > { %v311_v60 = vpop.f32.mrf.mxu3 }
 0x427   : > { %v316_v61 = vpop.permute.xlu0 %315 }
 0x428   : > { %319 = vst.msk [vmem:[%s693_s30] sm:$0xf] %vm318_vm7, %v316_v61 }
 0x42a   : > { %v465_v62 = vpop.f32.mrf.mxu2 }
 0x42b   : > { %v469_v63 = vpack.c.bf16 %v465_v62, %v465_v62 }
 0x42d   : > { %471 = vrot.lane.b32.xlu1 %v469_v63, %s619_s6 }
 0x432   : > { %v467_v0 = vpop.f32.mrf.mxu2 }
 0x439   : > { %v387_v1 = vpop.f32.mrf.mxu3 }
 0x43a   : > { %v391_v3 = vpack.c.bf16 %v387_v1, %v387_v1 }
 0x43c   : > { %393 = vrot.lane.b32.xlu2 %v391_v3, %s620_s7 }
 0x441   : > { %v389_v4 = vpop.f32.mrf.mxu3 }
 0x496   : > { %v394_v5 = vpop.permute.xlu2 %393 }
 0x497   : > { %397 = vst.msk [vmem:[%s693_s30] sm:$0xf] %vm396_vm3, %v394_v5 }
 0x49f   : > { %v472_v6 = vpop.permute.xlu1 %471 }
 0x4a0   : > { %475 = vst.msk [vmem:[%s693_s30] sm:$0xf] %vm474_vm0, %v472_v6 }
 0x4a1 PF: > { %s12_s9 = sadd.s32 1, %s604_s9  }
 0x4a2   : > { %p9_p4 = scmp.ge.s32.totalorder %s12_s9, 4  }
 0x4a4   :  { %11 = sbr.rel (!%p9_p4) target bundleno = 1 (0x1), region = 61 }

// kernel: switch_decoder_layer.13
= control target key start
LH: loop header
LB: loop body
LE: loop exit
PB: predicated region body
PF: predicated region fallthrough
CT: control target
= control target key end

     0   :  { %vm40_vm0 = vcmask 261120   ;;  %vm68_vm1 = vcmask 519168   ;;  %vm71_vm2 = vcmask 517120   ;;  %s139_s1 = inlined_call_operand.vmem [shape: bf16[32,64], index: 1, kind: input, shape index: {}]   ;;  %s140_s0 = inlined_call_operand.vmem [shape: f32[20,32], index: 0, kind: input, shape index: {}]   ;;  %s141_s2 = inlined_call_operand.vmem [shape: f32[1,64], index: 2, kind: input, shape index: {}]   ;;  %s142_s3 = inlined_call_operand.vmem [shape: bf16[20,64], index: 3, kind: output, shape index: {}]  }
   0x1   :  { %v88_v0 = vld [vmem:[%s139_s1 + $0x8] sm:$0xff]  ;;  %v87_v1 = vld [vmem:[%s139_s1] sm:$0xff]  ;;  %v17_v4 = vld [vmem:[%s140_s0 + $0x10] sm:$0xf] }
   0x2   :  { %53 = vmatpush.bf16.msra.mxu0 %v88_v0  ;;  %89 = vmatpush.bf16.msra.mxu1 %v88_v0  ;;  %v15_v2 = vld [vmem:[%s140_s0] sm:$0xff]  ;;  %v16_v3 = vld [vmem:[%s140_s0 + $0x8] sm:$0xff]  ;;  %v19_v6 = vpack.c.bf16 %v17_v4, %v17_v4 }
   0x3   :  { %v18_v5 = vpack.c.bf16 %v16_v3, %v15_v2  ;;  %v91_v7 = vld [vmem:[%s141_s2] ss:$0 sm:$0xff] }
   0x6   :  { %54 = vmatpush.bf16.msra.mxu0 %v87_v1  ;;  %90 = vmatpush.bf16.msra.mxu1 %v87_v1 }
   0x9   :  { %85 = vmatmul.msk.bf16.vlgmr.msra.gmra.mxu0 %vm40_vm0, %v18_v5  ;;  %86 = vmatmul.msk.bf16.vlgmr.msra.gmra.mxu1 %vm40_vm0, %v19_v6 }
  0x86   :  { %v56_v8 = vpop.f32.mrf.mxu0  ;;  %v61_v9 = vpop.f32.mrf.mxu1 }
  0x87   :  { %v57_v10 = vadd.f32 %v91_v7, %v56_v8  ;;  %v62_v11 = vadd.f32 %v91_v7, %v61_v9 }
  0x89   :  { %v65_v12 = vpack.c.bf16 %v57_v10, %v57_v10  ;;  %v67_v13 = vpack.c.bf16 %v62_v11, %v62_v11 }
  0x8b   :  { %69 = vst.msk [vmem:[%s142_s3] sm:$0xf] %vm68_vm1, %v65_v12 }
  0x8c   :  { %72 = vst.msk [vmem:[%s142_s3 + $0x8] sm:$0x3] %vm71_vm2, %v67_v13 }
  0x8e   :  { %v58_v14 = vpop.f32.mrf.mxu0  ;;  %v63_v15 = vpop.f32.mrf.mxu1 }
  0x8f   :  { %v59_v16 = vadd.f32 %v91_v7, %v58_v14 }
  0x91   :  { %v66_v17 = vpack.c.bf16 %v59_v16, %v59_v16 }
  0x93   :  { %70 = vst.msk [vmem:[%s142_s3 + $0x4] sm:$0xf] %vm68_vm1, %v66_v17 }

// kernel: squeeze.3
= control target key start
LH: loop header
LB: loop body
LE: loop exit
PB: predicated region body
PF: predicated region fallthrough
CT: control target
= control target key end

     0   :  { %vm7_vm0 = vcmask 64512   ;;  %s39_s0 = inlined_call_operand.vmem [shape: f32[16], index: 0, kind: input, shape index: {}]   ;;  %s40_s1 = inlined_call_operand.vmem [shape: f32[2,8], index: 1, kind: output, shape index: {}]  }
   0x1   :  { %v4_v0 = vld [vmem:[%s39_s0] sm:$0x1]  ;;  %s22_s0 = smov 120  }
   0x2   :  { %5 = vst [vmem:[#allocation1] sm:$0x1] %v4_v0 }
   0x9   :  { %v9_v1 = vld [vmem:[#allocation1] sm:$0x1]  }
   0xa   :  { %v6_v2 = vld [vmem:[#allocation1] sm:$0x1]   ;;  %10 = vrot.lane.b32.xlu0 %v9_v1, %s22_s0 }
   0xb   :  { %8 = vst.msk [vmem:[#allocation0] sm:$0x1] %vm7_vm0, %v6_v2  }
  0x7c   :  { %v11_v3 = vpop.permute.xlu0 %10  }
  0x7d   :  { %14 = vst.msk [vmem:[#allocation0 + $0x1] sm:$0x1] %vm7_vm0, %v11_v3  }
  0x84   :  { %v17_v4 = vld [vmem:[#allocation0] sm:$0x3] }
  0x85   :  { %20 = vst [vmem:[%s40_s1] sm:$0x3] %v17_v4 }

// kernel: switch_decoder_layer.14
= control target key start
LH: loop header
LB: loop body
LE: loop exit
PB: predicated region body
PF: predicated region fallthrough
CT: control target
= control target key end

     0   :  { %s706_s12 = smov 0   ;;  %s798_s0 = inlined_call_operand.vmem [shape: bf16[2,8,32], index: 0, kind: input, shape index: {}]   ;;  %s799_s1 = inlined_call_operand.vmem [shape: bf16[2,10,64], index: 1, kind: input, shape index: {}]   ;;  %s800_s2 = inlined_call_operand.vmem [shape: s8[2,8,10], index: 2, kind: input, shape index: {}]   ;;  %s801_s3 = inlined_call_operand.vmem [shape: bf16[2,8,32], index: 3, kind: output, shape index: {}]  }
   0x1 LB: > { %s606_s13 = sadd.s32 4294967295, %s673_s12   ;;  %p610_p0 = scmp.ge.s32.totalorder %s673_s12, 1  ;;  %s673_s12 = sphi %s706_s12, %s13_s12  }
   0x2   : > { %p155_p1 = scmp.lt.s32.totalorder %s673_s12, 3 }
   0x4   : > { %p156_p2 = pnand %p610_p0, %p155_p1 }
   0x5   : > { %p186_p3 = scmp.lt.s32.totalorder (!%p156_p2), %s606_s13, 1  ;;  %s675_s22 = smov (!%p156_p2), 120  }
   0x6   : > { %159 = sbr.rel (%p156_p2) target bundleno = 1105 (0x451), region = 32  ;;  %s677_s27 = smov (!%p156_p2), 96  }
   0x7   : > { %s678_s28 = smov (!%p156_p2), 112   ;;  %s679_s29 = smov (!%p156_p2), 104  }
   0x8   : > { %s680_s6 = smov (!%p156_p2), 80   ;;  %s681_s7 = smov (!%p156_p2), 72  }
   0x9   : > { %s682_s8 = smov (!%p156_p2), 88   ;;  %s683_s9 = smov (!%p156_p2), 24  }
   0xa   : > { %s684_s10 = smov (!%p156_p2), 8   ;;  %s685_s11 = smov (!%p156_p2), 16  }
   0xb   : > { %s805_s13 = smov (!%p186_p3, %s606_s13), 1  ;;  %vm216_vm0 = vcmask 64512   ;;  %v676_v8 = vmov 0   ;;  %vm241_vm3 = vcmask 80896   ;;  %vm272_vm4 = vcmask 1044480  }
   0xc   : > { %s630_s14 = sshll.u32 %s805_s13, 3  ;;  %s611_s18 = sshll.u32 %s805_s13, 2  ;;  %vm290_vm9 = vcmask 60416  }
   0xd   : > { %s194_s17 = scalar_lea.vmem %s799_s1, %s630_s14  ;;  %s189_s21 = scalar_lea.vmem %s798_s0, %s611_s18 }
   0xe   : > { %v618_v0 = vld [vmem:[%s194_s17] sm:$0xf]  ;;  %v631_v1 = vld [vmem:[%s194_s17] sm:$0x10]  ;;  %s614_s23 = sshll.u32 %s805_s13, 1  ;;  %s763_s5 = scalar_lea.vmem %s801_s3, %s611_s18 }
   0xf   : > { %v720_v2 = vor.u32 %v631_v1, %v618_v0  ;;  %v208_v4 = vld [vmem:[%s189_s21] sm:$0xf]  ;;  %s198_s26 = scalar_lea.vmem %s800_s2, %s614_s23 }
  0x10   : > { %v293_v5 = vunpack.c.l.b16 %v208_v4  ;;  %v209_v7 = vld [vmem:[%s198_s26] sm:$0x3] }
  0x11   : > { %v221_v3 = vsel %vm216_vm0, %v720_v2, 0  ;;  %297 = vrot.lane.b32.xlu1 %v720_v2, %s675_s22  ;;  %vm210_vm1 = vnez %v209_v7  ;;  %267 = vrot.lane.b32.xlu2 %v720_v2, %s677_s27 }
  0x12   : > { %230 = vmatpush.bf16.xpose.msra.mxu0 %v221_v3  ;;  %v294_v6 = vpack.c.b16 %v293_v5, %v293_v5  ;;  %v237_v9 = vsel %vm210_vm1, 16843009, %v676_v8 }
  0x13   : > { %v238_v10 = vunpack.c.0.s8 %v237_v9 }
  0x15   : > { %vm736_vm2 = vcmp.ne.s32.totalorder %v238_v10, 0 }
  0x19   : > { %620 = vmatmul.msk.bf16.vlgmr.msra.gmra.mxu0 %vm216_vm0, %v208_v4  ;;  %295 = vrot.lane.b32.xlu1 %v294_v6, %s675_s22 }
  0x1a   : > { %375 = vrot.lane.b32.xlu2 %v720_v2, %s678_s28 }
  0x21   : > { %373 = vrot.lane.b32.xlu1 %v294_v6, %s678_s28 }
  0x22   : > { %451 = vrot.lane.b32.xlu2 %v294_v6, %s679_s29 }
  0x6b   : > { %v268_v25 = vpop.permute.xlu2 %267 }
  0x6c   : > { %v274_v26 = vsel %vm272_vm4, %v268_v25, 0 }
  0x6d   : > { %283 = vmatpush.bf16.msra.mxu1 %v274_v26 }
  0x74   : > { %v376_v27 = vpop.permute.xlu2 %375 }
  0x75   : > { %v381_v28 = vsel %vm216_vm0, %v376_v27, 0 }
  0x76   : > { %390 = vmatpush.bf16.xpose.msrb.mxu1 %v381_v28 }
  0x7c   : > { %v452_v49 = vpop.permute.xlu2 %451 }
  0x83   : > { %v298_v17 = vpop.permute.xlu1 %297 }
  0x84   : > { %v303_v18 = vsel %vm216_vm0, %v298_v17, 0 }
  0x85   : > { %312 = vmatpush.bf16.xpose.msra.mxu2 %v303_v18 }
  0x8b   : > { %v296_v21 = vpop.permute.xlu1 %295 }
  0x8c   : > { %622 = vmatmul.msk.bf16.vlgmr.msra.gmra.mxu2 %vm216_vm0, %v296_v21 }
  0x93   : > { %v374_v50 = vpop.permute.xlu1 %373 }
  0x96   : > { %v232_v11 = vpop.f32.mrf.mxu0 }
  0x97   : > { %v236_v13 = vmul.f32 0.35355338, %v232_v11 }
  0x99   : > { %v240_v14 = vsel %vm736_vm2, %v236_v13, -1e+30 }
  0x9a   : > { %v242_v15 = vsel %vm241_vm3, %v240_v14, -inf }
  0x9b   : > { %243 = vmax.xlane.f32.xlu0 %v242_v15 }
  0x9e   : > { %v234_v16 = vpop.f32.mrf.mxu0 }
 0x10e   : > { %v244_v19 = vpop.xlane.xlu0 %243 }
 0x10f   : > { %v245_v20 = vsub.f32 %v240_v14, %v244_v19  ;;  %v314_v30 = vpop.f32.mrf.mxu2 }
 0x110   : > { %v318_v32 = vmul.f32 0.35355338, %v314_v30 }
 0x111   : > { %v246_v22 = vmul.f32 1.442695, %v245_v20 }
 0x112   : > { %v319_v34 = vsel %vm736_vm2, %v318_v32, -1e+30 }
 0x113   : > { %651 = vpow2.f32 %v246_v22  ;;  %v320_v36 = vsel %vm241_vm3, %v319_v34, -inf }
 0x114   : > { %321 = vmax.xlane.f32.xlu1 %v320_v36 }
 0x117   : > { %v316_v41 = vpop.f32.mrf.mxu2 }
 0x119   : > { %v652_v23 = vpop.eup %651 }
 0x11a   : > { %v248_v24 = vsel %vm241_vm3, %v652_v23, 0.0 }
 0x11b   : > { %249 = vadd.xlane.f32.xlu0 %v248_v24 }
 0x12f   : > { %453 = vrot.lane.b32.xlu0 %v720_v2, %s679_s29 }
 0x187   : > { %v322_v54 = vpop.xlane.xlu1 %321 }
 0x188   : > { %v323_v58 = vsub.f32 %v319_v34, %v322_v54 }
 0x18a   : > { %v324_v60 = vmul.f32 1.442695, %v323_v58 }
 0x18e   : > { %v250_v29 = vpop.xlane.xlu0 %249 }
 0x18f   : > { %653 = vrcp.f32 %v250_v29  ;;  %v262_v37 = vand.u32 2147483648, %v250_v29  ;;  %v260_v39 = vand.u32 2147483647, %v250_v29  ;;  %vm256_vm6 = vweird.f32 %v250_v29 }
 0x190   : > { %655 = vpow2.f32 %v324_v60 }
 0x191   : > { %v263_v42 = vor.u32 1.1754944e-38, %v262_v37  ;;  %vm261_vm8 = vcmp.eq.f32.partialorder %v260_v39, 8.507059e+37 }
 0x195   : > { %v654_v31 = vpop.eup %653 }
 0x196   : > { %v252_v33 = vmul.f32 %v654_v31, %v250_v29  ;;  %vm257_vm5 = vweird.f32 %v654_v31  ;;  %v772_v3 = vpop.eup %655 }
 0x197   : > { %vm258_vm7 = vmor %vm256_vm6, %vm257_vm5  ;;  %v326_v5 = vsel %vm241_vm3, %v772_v3, 0.0 }
 0x198   : > { %v253_v35 = vsub.f32 1.0, %v252_v33 }
 0x19a   : > { %v254_v38 = vmul.f32 %v654_v31, %v253_v35 }
 0x19c   : > { %v255_v40 = vadd.f32 %v654_v31, %v254_v38 }
 0x19e   : > { %v259_v43 = vsel %vm258_vm7, %v654_v31, %v255_v40 }
 0x19f   : > { %v264_v44 = vsel %vm261_vm8, %v263_v42, %v259_v43  ;;  %vm527_vm8 = vcmask 257216  }
 0x1a0   : > { %v265_v45 = vmul.f32 %v652_v23, %v264_v44 }
 0x1a1   : > { %v454_v46 = vpop.permute.xlu0 %453 }
 0x1a2   : > { %v459_v47 = vsel %vm216_vm0, %v454_v46, 0  ;;  %v266_v48 = vpack.c.bf16 %v265_v45, %v265_v45 }
 0x1a3   : > { %468 = vmatpush.bf16.xpose.msrb.mxu0 %v459_v47 }
 0x1a4   : > { %621 = vmatmul.msk.bf16.vlgmr.msra.gmra.mxu1 %vm241_vm3, %v266_v48 }
 0x1aa   : > { %626 = vmatmul.msk.bf16.vlgmr.msrb.gmra.mxu0 %vm216_vm0, %v452_v49 }
 0x1b4   : > { %624 = vmatmul.msk.bf16.vlgmr.msrb.gmra.mxu1 %vm216_vm0, %v374_v50 }
 0x221   : > { %v285_v51 = vpop.f32.mrf.mxu1 }
 0x222   : > { %v289_v52 = vpack.c.bf16 %v285_v51, %v285_v51 }
 0x224   : > { %291 = vst.msk [vmem:[%s763_s5] sm:$0xf] %vm290_vm9, %v289_v52 }
 0x227   : > { %v470_v53 = vpop.f32.mrf.mxu0 }
 0x228   : > { %v474_v55 = vmul.f32 0.35355338, %v470_v53 }
 0x229   : > { %v287_v56 = vpop.f32.mrf.mxu1 }
 0x22a   : > { %v475_v57 = vsel %vm736_vm2, %v474_v55, -1e+30 }
 0x22b   : > { %v476_v59 = vsel %vm241_vm3, %v475_v57, -inf }
 0x22c   : > { %477 = vmax.xlane.f32.xlu0 %v476_v59 }
 0x22f   : > { %v472_v61 = vpop.f32.mrf.mxu0 }
 0x231   : > { %v392_v62 = vpop.f32.mrf.mxu1 }
 0x232   : > { %v396_v63 = vmul.f32 0.35355338, %v392_v62 }
 0x234   : > { %v397_v0 = vsel %vm736_vm2, %v396_v63, -1e+30 }
 0x235   : > { %v398_v1 = vsel %vm241_vm3, %v397_v0, -inf }
 0x236   : > { %399 = vmax.xlane.f32.xlu2 %v398_v1 }
 0x239   : > { %v394_v4 = vpop.f32.mrf.mxu1 }
 0x23e   : > { %327 = vadd.xlane.f32.xlu2 %v326_v5 }
 0x240   : > { %423 = vrot.lane.b32.xlu0 %v720_v2, %s680_s6 }
 0x29f   : > { %v478_v6 = vpop.xlane.xlu0 %477 }
 0x2a0   : > { %v479_v7 = vsub.f32 %v475_v57, %v478_v6 }
 0x2a2   : > { %v480_v8 = vmul.f32 1.442695, %v479_v7 }
 0x2a4   : > { %657 = vpow2.f32 %v480_v8 }
 0x2a9   : > { %v400_v9 = vpop.xlane.xlu2 %399 }
 0x2aa   : > { %v658_v10 = vpop.eup %657  ;;  %v401_v11 = vsub.f32 %v397_v0, %v400_v9 }
 0x2ab   : > { %v482_v12 = vsel %vm241_vm3, %v658_v10, 0.0 }
 0x2ac   : > { %v402_v13 = vmul.f32 1.442695, %v401_v11  ;;  %483 = vadd.xlane.f32.xlu2 %v482_v12 }
 0x2ae   : > { %659 = vpow2.f32 %v402_v13 }
 0x2b1   : > { %v328_v16 = vpop.xlane.xlu2 %327 }
 0x2b2   : > { %v340_v38 = vand.u32 2147483648, %v328_v16  ;;  %vm334_vm15 = vweird.f32 %v328_v16  ;;  %v338_v39 = vand.u32 2147483647, %v328_v16  ;;  %v424_v45 = vpop.permute.xlu0 %423 }
 0x2b3   : > { %v429_v48 = vsel %vm272_vm4, %v424_v45, 0 }
 0x2b4   : > { %v778_v14 = vpop.eup %659  ;;  %v341_v42 = vor.u32 1.1754944e-38, %v340_v38  ;;  %vm339_vm1 = vcmp.eq.f32.partialorder %v338_v39, 8.507059e+37 }
 0x2b5   : > { %v404_v15 = vsel %vm241_vm3, %v778_v14, 0.0 }
 0x2b6   : > { %405 = vadd.xlane.f32.xlu1 %v404_v15 }
 0x2c4   : > { %501 = vrot.lane.b32.xlu2 %v720_v2, %s681_s7 }
 0x2cf   : > { %345 = vrot.lane.b32.xlu1 %v720_v2, %s682_s8 }
 0x31f   : > { %v484_v17 = vpop.xlane.xlu2 %483 }
 0x320   : > { %661 = vrcp.f32 %v484_v17  ;;  %v496_v25 = vand.u32 2147483648, %v484_v17  ;;  %v494_v27 = vand.u32 2147483647, %v484_v17  ;;  %vm490_vm11 = vweird.f32 %v484_v17 }
 0x321   : > { %663 = vrcp.f32 %v328_v16 }
 0x322   : > { %v497_v29 = vor.u32 1.1754944e-38, %v496_v25  ;;  %vm495_vm13 = vcmp.eq.f32.partialorder %v494_v27, 8.507059e+37 }
 0x326   : > { %v662_v18 = vpop.eup %661 }
 0x327   : > { %v664_v19 = vpop.eup %663  ;;  %v486_v20 = vmul.f32 %v662_v18, %v484_v17  ;;  %v502_v21 = vpop.permute.xlu2 %501  ;;  %vm491_vm10 = vweird.f32 %v662_v18 }
 0x328   : > { %v507_v22 = vsel %vm272_vm4, %v502_v21, 0  ;;  %v330_v24 = vmul.f32 %v664_v19, %v328_v16  ;;  %vm492_vm12 = vmor %vm490_vm11, %vm491_vm10  ;;  %vm335_vm14 = vweird.f32 %v664_v19 }
 0x329   : > { %v487_v23 = vsub.f32 1.0, %v486_v20  ;;  %516 = vmatpush.bf16.msrb.mxu2 %v507_v22  ;;  %v406_v30 = vpop.xlane.xlu1 %405  ;;  %vm336_vm0 = vmor %vm334_vm15, %vm335_vm14 }
 0x32a   : > { %v331_v2 = vsub.f32 1.0, %v330_v24  ;;  %665 = vrcp.f32 %v406_v30  ;;  %v418_v53 = vand.u32 2147483648, %v406_v30  ;;  %vm412_vm5 = vweird.f32 %v406_v30 }
 0x32b   : > { %v488_v26 = vmul.f32 %v662_v18, %v487_v23  ;;  %v416_v54 = vand.u32 2147483647, %v406_v30 }
 0x32c   : > { %v332_v34 = vmul.f32 %v664_v19, %v331_v2  ;;  %v419_v56 = vor.u32 1.1754944e-38, %v418_v53 }
 0x32d   : > { %v489_v28 = vadd.f32 %v662_v18, %v488_v26  ;;  %vm417_vm7 = vcmp.eq.f32.partialorder %v416_v54, 8.507059e+37 }
 0x32e   : > { %v333_v36 = vadd.f32 %v664_v19, %v332_v34 }
 0x32f   : > { %v493_v31 = vsel %vm492_vm12, %v662_v18, %v489_v28 }
 0x330   : > { %v498_v32 = vsel %vm495_vm13, %v497_v29, %v493_v31  ;;  %v666_v37 = vpop.eup %665  ;;  %v337_v41 = vsel %vm336_vm0, %v664_v19, %v333_v36 }
 0x331   : > { %v499_v33 = vmul.f32 %v658_v10, %v498_v32  ;;  %v408_v40 = vmul.f32 %v666_v37, %v406_v30  ;;  %v342_v43 = vsel %vm339_vm1, %v341_v42, %v337_v41  ;;  %vm413_vm2 = vweird.f32 %v666_v37 }
 0x332   : > { %v343_v46 = vmul.f32 %v772_v3, %v342_v43  ;;  %vm414_vm6 = vmor %vm412_vm5, %vm413_vm2 }
 0x333   : > { %v500_v35 = vpack.c.bf16 %v499_v33, %v499_v33  ;;  %v409_v44 = vsub.f32 1.0, %v408_v40 }
 0x334   : > { %v344_v51 = vpack.c.bf16 %v343_v46, %v343_v46 }
 0x335   : > { %627 = vmatmul.msk.bf16.vlgmr.msrb.gmra.mxu2 %vm241_vm3, %v500_v35  ;;  %v410_v49 = vmul.f32 %v666_v37, %v409_v44 }
 0x337   : > { %v411_v52 = vadd.f32 %v666_v37, %v410_v49 }
 0x339   : > { %v415_v55 = vsel %vm414_vm6, %v666_v37, %v411_v52 }
 0x33a   : > { %v420_v57 = vsel %vm417_vm7, %v419_v56, %v415_v55 }
 0x33b   : > { %v421_v58 = vmul.f32 %v778_v14, %v420_v57 }
 0x33d   : > { %v422_v59 = vpack.c.bf16 %v421_v58, %v421_v58 }
 0x341   : > { %v346_v47 = vpop.permute.xlu1 %345 }
 0x342   : > { %v351_v50 = vsel %vm272_vm4, %v346_v47, 0  ;;  %vm371_vm4 = vcmask 126016  }
 0x343   : > { %360 = vmatpush.bf16.msra.mxu3 %v351_v50 }
 0x346   : > { %623 = vmatmul.msk.bf16.vlgmr.msra.gmra.mxu3 %vm241_vm3, %v344_v51 }
 0x347   : > { %438 = vmatpush.bf16.msrb.mxu3 %v429_v48 }
 0x356   : > { %625 = vmatmul.msk.bf16.vlgmr.msrb.gmra.mxu3 %vm241_vm3, %v422_v59  ;;  %vm449_vm3 = vcmask 191616  }
 0x3b8   : > { %v518_v60 = vpop.f32.mrf.mxu2 }
 0x3b9   : > { %v522_v61 = vpack.c.bf16 %v518_v60, %v518_v60 }
 0x3bb   : > { %524 = vrot.lane.b32.xlu2 %v522_v61, %s683_s9 }
 0x3c0   : > { %v520_v62 = vpop.f32.mrf.mxu2 }
 0x3c9   : > { %v362_v63 = vpop.f32.mrf.mxu3 }
 0x3ca   : > { %v366_v0 = vpack.c.bf16 %v362_v63, %v362_v63 }
 0x3cc   : > { %368 = vrot.lane.b32.xlu0 %v366_v0, %s684_s10 }
 0x3d1   : > { %v364_v1 = vpop.f32.mrf.mxu3 }
 0x3d9   : > { %v440_v3 = vpop.f32.mrf.mxu3 }
 0x3da   : > { %v444_v4 = vpack.c.bf16 %v440_v3, %v440_v3 }
 0x3dc   : > { %446 = vrot.lane.b32.xlu1 %v444_v4, %s685_s11 }
 0x3e1   : > { %v442_v5 = vpop.f32.mrf.mxu3 }
 0x415   : > { %v525_v8 = vpop.permute.xlu2 %524 }
 0x43e   : > { %v369_v6 = vpop.permute.xlu0 %368 }
 0x43f   : > { %372 = vst.msk [vmem:[%s763_s5] sm:$0xf] %vm371_vm4, %v369_v6 }
 0x44e   : > { %v447_v7 = vpop.permute.xlu1 %446 }
 0x44f   : > { %450 = vst.msk [vmem:[%s763_s5] sm:$0xf] %vm449_vm3, %v447_v7 }
 0x450   : > { %528 = vst.msk [vmem:[%s763_s5] sm:$0xf] %vm527_vm8, %v525_v8 }
 0x451 PF: > { %s13_s12 = sadd.s32 1, %s673_s12  }
 0x452   : > { %p10_p4 = scmp.ge.s32.totalorder %s13_s12, 4  }
 0x454   :  { %12 = sbr.rel (!%p10_p4) target bundleno = 1 (0x1), region = 68 }

// kernel: switch_decoder_layer.16
= control target key start
LH: loop header
LB: loop body
LE: loop exit
PB: predicated region body
PF: predicated region fallthrough
CT: control target
= control target key end

     0   :  { %vm41_vm0 = vcmask 261120   ;;  %vm59_vm1 = vcmask 31744   ;;  %v114_v48 = vlaneseq  ;;  %vm152_vm10 = vcmask 7168   ;;  %s266_s1 = inlined_call_operand.vmem [shape: bf16[32,4], index: 1, kind: input, shape index: {}]   ;;  %s267_s0 = inlined_call_operand.vmem [shape: f32[16,32], index: 0, kind: input, shape index: {}]   ;;  %s268_s2 = inlined_call_operand.vmem [shape: f32[1,4], index: 2, kind: input, shape index: {}]   ;;  %s269_s3 = inlined_call_operand.vmem [shape: f32[16,4], index: 3, kind: output, shape index: {0}]   ;;  %s270_s5 = inlined_call_operand.vmem [shape: f32[16,1], index: 5, kind: output, shape index: {2}]   ;;  %s271_s4 = inlined_call_operand.vmem [shape: s32[16,1], index: 4, kind: output, shape index: {1}]  }
   0x1   :  { %v179_v0 = vld [vmem:[%s266_s1 + $0x8] sm:$0xff]  ;;  %v178_v1 = vld [vmem:[%s266_s1] sm:$0xff] }
   0x2   :  { %51 = vmatpush.bf16.msra.mxu0 %v179_v0  ;;  %v18_v2 = vld [vmem:[%s267_s0] sm:$0xff]  ;;  %v19_v3 = vld [vmem:[%s267_s0 + $0x8] sm:$0xff]  ;;  %v115_v49 = vand.u32 127, %v114_v48 }
   0x3   :  { %v20_v4 = vpack.c.bf16 %v19_v3, %v18_v2  ;;  %v180_v5 = vld [vmem:[%s268_s2] ss:$0 sm:$0xff] }
   0x6   :  { %52 = vmatpush.bf16.msra.mxu0 %v178_v1 }
   0x9   :  { %177 = vmatmul.msk.bf16.vlgmr.msra.gmra.mxu0 %vm41_vm0, %v20_v4 }
  0x86   :  { %v54_v6 = vpop.f32.mrf.mxu0 }
  0x87   :  { %v55_v7 = vadd.f32 %v180_v5, %v54_v6 }
  0x89   :  { %v60_v8 = vsel %vm59_vm1, %v55_v7, -inf }
  0x8a   :  { %61 = vmax.xlane.f32.xlu0 %v60_v8 }
  0x8e   :  { %v56_v9 = vpop.f32.mrf.mxu0 }
  0x8f   :  { %v57_v10 = vadd.f32 %v180_v5, %v56_v9 }
  0x91   :  { %v63_v11 = vsel %vm59_vm1, %v57_v10, -inf }
  0x92   :  { %64 = vmax.xlane.f32.xlu0 %v63_v11 }
  0xfd   :  { %v62_v12 = vpop.xlane.xlu0 %61 }
  0xfe   :  { %v66_v13 = vsub.f32 %v55_v7, %v62_v12 }
 0x100   :  { %v68_v14 = vmul.f32 1.442695, %v66_v13 }
 0x102   :  { %181 = vpow2.f32 %v68_v14 }
 0x105   :  { %v65_v15 = vpop.xlane.xlu0 %64 }
 0x106   :  { %v67_v16 = vsub.f32 %v57_v10, %v65_v15 }
 0x108   :  { %v182_v17 = vpop.eup %181  ;;  %v70_v18 = vmul.f32 1.442695, %v67_v16 }
 0x109   :  { %v72_v19 = vsel %vm59_vm1, %v182_v17, 0.0 }
 0x10a   :  { %183 = vpow2.f32 %v70_v18  ;;  %73 = vadd.xlane.f32.xlu1 %v72_v19 }
 0x110   :  { %v184_v20 = vpop.eup %183 }
 0x111   :  { %v75_v21 = vsel %vm59_vm1, %v184_v20, 0.0 }
 0x112   :  { %76 = vadd.xlane.f32.xlu1 %v75_v21 }
 0x17d   :  { %v74_v22 = vpop.xlane.xlu1 %73 }
 0x17e   :  { %185 = vrcp.f32 %v74_v22  ;;  %v89_v27 = vand.u32 2147483648, %v74_v22  ;;  %v87_v29 = vand.u32 2147483647, %v74_v22  ;;  %vm83_vm3 = vweird.f32 %v74_v22 }
 0x180   :  { %v90_v32 = vor.u32 1.1754944e-38, %v89_v27  ;;  %vm88_vm5 = vcmp.eq.f32.partialorder %v87_v29, 8.507059e+37 }
 0x184   :  { %v186_v23 = vpop.eup %185 }
 0x185   :  { %v79_v24 = vmul.f32 %v186_v23, %v74_v22  ;;  %v77_v25 = vpop.xlane.xlu1 %76  ;;  %vm84_vm2 = vweird.f32 %v186_v23 }
 0x186   :  { %187 = vrcp.f32 %v77_v25  ;;  %vm85_vm4 = vmor %vm83_vm3, %vm84_vm2  ;;  %v104_v38 = vand.u32 2147483648, %v77_v25  ;;  %v102_v40 = vand.u32 2147483647, %v77_v25  ;;  %vm98_vm7 = vweird.f32 %v77_v25 }
 0x187   :  { %v80_v26 = vsub.f32 1.0, %v79_v24 }
 0x188   :  { %v105_v43 = vor.u32 1.1754944e-38, %v104_v38  ;;  %vm103_vm9 = vcmp.eq.f32.partialorder %v102_v40, 8.507059e+37 }
 0x189   :  { %v81_v28 = vmul.f32 %v186_v23, %v80_v26 }
 0x18b   :  { %v82_v30 = vadd.f32 %v186_v23, %v81_v28 }
 0x18c   :  { %v188_v31 = vpop.eup %187 }
 0x18d   :  { %v94_v33 = vmul.f32 %v188_v31, %v77_v25  ;;  %v86_v34 = vsel %vm85_vm4, %v186_v23, %v82_v30  ;;  %vm99_vm6 = vweird.f32 %v188_v31 }
 0x18e   :  { %v91_v35 = vsel %vm88_vm5, %v90_v32, %v86_v34  ;;  %vm100_vm8 = vmor %vm98_vm7, %vm99_vm6 }
 0x18f   :  { %v95_v36 = vsub.f32 1.0, %v94_v33  ;;  %v92_v37 = vmul.f32 %v182_v17, %v91_v35 }
 0x191   :  { %v96_v39 = vmul.f32 %v188_v31, %v95_v36  ;;  %v108_v41 = vsel %vm59_vm1, %v92_v37, -inf  ;;  %150 = vst.msk [vmem:[%s269_s3] sm:$0xff] %vm59_vm1, %v92_v37 }
 0x192   :  { %109 = vmax.xlane.f32.xlu2 %v108_v41 }
 0x193   :  { %v97_v42 = vadd.f32 %v188_v31, %v96_v39 }
 0x195   :  { %v101_v44 = vsel %vm100_vm8, %v188_v31, %v97_v42 }
 0x196   :  { %v106_v45 = vsel %vm103_vm9, %v105_v43, %v101_v44 }
 0x197   :  { %v107_v46 = vmul.f32 %v184_v20, %v106_v45 }
 0x199   :  { %v111_v47 = vsel %vm59_vm1, %v107_v46, -inf  ;;  %151 = vst.msk [vmem:[%s269_s3 + $0x8] sm:$0xff] %vm59_vm1, %v107_v46 }
 0x19a   :  { %112 = vmax.xlane.f32.xlu2 %v111_v47 }
 0x205   :  { %v110_v50 = vpop.xlane.xlu2 %109 }
 0x206   :  { %vm116_vm11 = vcmp.ge.f32.partialorder %v92_v37, %v110_v50  ;;  %155 = vst.msk [vmem:[%s270_s5] sm:$0xff] %vm152_vm10, %v110_v50 }
 0x207   :  { %v118_v51 = vsel %vm116_vm11, %v115_v49, 4 }
 0x208   :  { %v120_v52 = vsel %vm59_vm1, %v118_v51, 2147483647 }
 0x209   :  { %v122_v53 = vshra.s32 %v120_v52, 16  ;;  %v121_v60 = vand.u32 65535, %v120_v52 }
 0x20b   :  { %v124_v54 = vcvt.s32.f32 %v122_v53  ;;  %v123_v62 = vcvt.s32.f32 %v121_v60 }
 0x20d   :  { %125 = vmin.xlane.f32.xlu0 %v124_v54  ;;  %v113_v55 = vpop.xlane.xlu2 %112 }
 0x20e   :  { %vm117_vm12 = vcmp.ge.f32.partialorder %v107_v46, %v113_v55  ;;  %156 = vst.msk [vmem:[%s270_s5 + $0x8] sm:$0xff] %vm152_vm10, %v113_v55 }
 0x20f   :  { %v119_v56 = vsel %vm117_vm12, %v115_v49, 4 }
 0x210   :  { %v135_v57 = vsel %vm59_vm1, %v119_v56, 2147483647 }
 0x211   :  { %v137_v58 = vshra.s32 %v135_v57, 16  ;;  %v136_v0 = vand.u32 65535, %v135_v57 }
 0x213   :  { %v139_v59 = vcvt.s32.f32 %v137_v58  ;;  %v138_v2 = vcvt.s32.f32 %v136_v0 }
 0x215   :  { %140 = vmin.xlane.f32.xlu1 %v139_v59 }
 0x280   :  { %v126_v61 = vpop.xlane.xlu0 %125 }
 0x281   :  { %vm127_vm13 = vcmp.eq.f32.partialorder %v124_v54, %v126_v61  ;;  %v132_v4 = vcvt.f32.s32 %v126_v61 }
 0x282   :  { %v128_v63 = vsel %vm127_vm13, %v123_v62, inf }
 0x283   :  { %129 = vmin.xlane.f32.xlu2 %v128_v63  ;;  %v133_v6 = vshll.u32 %v132_v4, 16 }
 0x288   :  { %v141_v1 = vpop.xlane.xlu1 %140 }
 0x289   :  { %vm142_vm14 = vcmp.eq.f32.partialorder %v139_v59, %v141_v1  ;;  %v147_v9 = vcvt.f32.s32 %v141_v1 }
 0x28a   :  { %v143_v3 = vsel %vm142_vm14, %v138_v2, inf }
 0x28b   :  { %144 = vmin.xlane.f32.xlu0 %v143_v3  ;;  %v148_v11 = vshll.u32 %v147_v9, 16 }
 0x2f6   :  { %v130_v5 = vpop.xlane.xlu2 %129 }
 0x2f7   :  { %v131_v7 = vcvt.f32.s32 %v130_v5 }
 0x2f9   :  { %v134_v8 = vadd.s32 %v133_v6, %v131_v7 }
 0x2fb   :  { %153 = vst.msk [vmem:[%s271_s4] sm:$0xff] %vm152_vm10, %v134_v8 }
 0x2fe   :  { %v145_v10 = vpop.xlane.xlu0 %144 }
 0x2ff   :  { %v146_v12 = vcvt.f32.s32 %v145_v10 }
 0x301   :  { %v149_v13 = vadd.s32 %v148_v11, %v146_v12 }
 0x303   :  { %154 = vst.msk [vmem:[%s271_s4 + $0x8] sm:$0xff] %vm152_vm10, %v149_v13 }

// kernel: switch_decoder_layer.17
= control target key start
LH: loop header
LB: loop body
LE: loop exit
PB: predicated region body
PF: predicated region fallthrough
CT: control target
= control target key end

     0   :  { %s1061_s30 = smov 0   ;;  %s1063_s10 = smov 0   ;;  %s1178_s0 = inlined_call_operand.vmem [shape: f32[16,32], index: 0, kind: input, shape index: {}]   ;;  %s1179_s1 = inlined_call_operand.vmem [shape: bf16[4,32,64], index: 1, kind: input, shape index: {}]   ;;  %s1180_s2 = inlined_call_operand.vmem [shape: f32[4,1,64], index: 2, kind: input, shape index: {}]   ;;  %s1181_s3 = inlined_call_operand.vmem [shape: bf16[4,64,32], index: 3, kind: input, shape index: {}]   ;;  %s1182_s4 = inlined_call_operand.vmem [shape: f32[4,1,32], index: 4, kind: input, shape index: {}]   ;;  %s1183_s5 = inlined_call_operand.vmem [shape: s32[16,1], index: 5, kind: input, shape index: {}]   ;;  %s1184_s6 = inlined_call_operand.vmem [shape: f32[16,1], index: 6, kind: input, shape index: {}]   ;;  %s1185_s7 = inlined_call_operand.vmem [shape: f32[1,32], index: 7, kind: input, shape index: {}]   ;;  %s1186_s8 = inlined_call_operand.vmem [shape: f32[1,32], index: 8, kind: input, shape index: {}]   ;;  %s1187_s9 = inlined_call_operand.vmem [shape: f32[16,32], index: 9, kind: output, shape index: {}]  }
   0x1   :  { %s1065_s11 = smov 0  }
   0x2 LB: > { %s34_s12 = sadd.s32 1, %s1002_s10  ;;  %p898_p0 = scmp.ge.s32.totalorder %s1006_s11, 1  ;;  %s1006_s11 = sphi %s1065_s11, %s19_s11   ;;  %s1002_s10 = sphi %s1063_s10, %s1189_s10   ;;  %s998_s30 = sphi %s1061_s30, %s1188_s30  }
   0x3   : > { %p36_p1 = scmp.ge.s32.totalorder %s34_s12, 4  ;;  %p382_p2 = scmp.lt.s32.totalorder %s1006_s11, 5 }
   0x5   : > { %s1191_s12 = smov (%p36_p1, %s34_s12), 0  ;;  %p383_p3 = pnand %p898_p0, %p382_p2 }
   0x6   : > { %p460_p4 = scmp.lt.s32.totalorder (!%p383_p3), %s998_s30, 3  ;;  %p506_p5 = scmp.eq.s32.totalorder (!%p383_p3), %s998_s30, 0 }
   0x7   : > { %386 = sbr.rel (%p383_p3) target bundleno = 583 (0x247), region = 56 }
   0xc   : > { %s1084_s13 = scalar_select %p460_p4, %s998_s30, 3  ;;  %vm512_vm0 = vcmask (%p506_p5), 261120   ;;  %v1008_v0 = vmov (%p506_p5), 0.0  }
   0xd   : > { %511 = sbr.rel (!%p506_p5) target bundleno = 18 (0x12), region = 60  ;;  %513 = vst.msk [vmem:[#allocation2] sm:$0xff] (%p506_p5), %vm512_vm0, %v1008_v0 }
   0xe   : > { %s935_s14 = sshll.u32 %s1084_s13, 4  ;;  %s473_s17 = scalar_lea.vmem %s1180_s2, %s1084_s13  ;;  %514 = vst.msk [vmem:[#allocation2 + $0x8] sm:$0xff] (%p506_p5), %vm512_vm0, %v1008_v0 }
   0xf   : > { %s467_s20 = scalar_lea.vmem %s1179_s1, %s935_s14  ;;  %s936_s21 = sshll.u32 %s1084_s13, 5 }
  0x10   : > { %s1098_s24 = scalar_lea.vmem %s1181_s3, %s936_s21  ;;  %s486_s27 = scalar_lea.vmem %s1182_s4, %s1084_s13 }
  0x12 PF: > { %v939_v1 = vld [vmem:[%s467_s20 + $0x8] sm:$0xff]  ;;  %v938_v2 = vld [vmem:[%s467_s20] sm:$0xff]  ;;  %vm547_vm1 = vcmask 261120   ;;  %v943_v6 = vld [vmem:[%s1098_s24 + $0x18] sm:$0xff]  ;;  %v1009_v8 = vmov 0   ;;  %v517_v10 = vstv %s998_s30  ;;  %vm600_vm4 = vcmask 523264  }
  0x13   : > { %557 = vmatpush.bf16.msra.mxu0 %v939_v1  ;;  %v524_v3 = vld [vmem:[%s1178_s0] sm:$0xff]  ;;  %v525_v4 = vld [vmem:[%s1178_s0 + $0x8] sm:$0xff]  ;;  %608 = vmatpush.bf16.msra.mxu1 %v943_v6  ;;  %v942_v7 = vld [vmem:[%s1098_s24 + $0x10] sm:$0xff]  ;;  %p661_p6 = scmp.eq.s32.totalorder %s998_s30, 3 }
  0x14   : > { %v526_v5 = vpack.c.bf16 %v525_v4, %v524_v3  ;;  %972 = vset.pattern.permute.xlu0 %v1009_v8  ;;  %v515_v9 = vld [vmem:[%s1183_s5] sm:$0xff]  ;;  %973 = vset.pattern.permute.xlu1 %v1009_v8  ;;  %v941_v11 = vld [vmem:[%s1098_s24 + $0x8] sm:$0xff]  ;;  %v1010_v53 = vmov (%p661_p6), 32.0  }
  0x15   : > { %vm518_vm2 = vcmp.eq.s32.totalorder %v515_v9, %v517_v10  ;;  %v520_v12 = vld [vmem:[%s1184_s6] sm:$0xff]  ;;  %v516_v15 = vld [vmem:[%s1183_s5 + $0x8] sm:$0xff]  ;;  %978 = vrcp.f32 (%p661_p6), %v1010_v53 }
  0x16   : > { %v522_v13 = vsel %vm518_vm2, %v520_v12, 0.0  ;;  %v940_v14 = vld [vmem:[%s1098_s24] sm:$0xff]  ;;  %vm519_vm3 = vcmp.eq.s32.totalorder %v516_v15, %v517_v10  ;;  %v521_v16 = vld [vmem:[%s1184_s6 + $0x8] sm:$0xff] }
  0x17   : > { %558 = vmatpush.bf16.msra.mxu0 %v938_v2  ;;  %609 = vmatpush.bf16.msra.mxu1 %v942_v7  ;;  %v523_v17 = vsel %vm519_vm3, %v521_v16, 0.0  ;;  %v974_v19 = vld [vmem:[%s473_s17] ss:$0 sm:$0xff]  ;;  %v622_v31 = vld [vmem:[#allocation2 + $0x8] sm:$0xff] }
  0x18   : > { %626 = vperm.xlu0 %972, %v522_v13   ;;  %647 = vperm.xlu1 %973, %v522_v13   ;;  %v975_v26 = vld [vmem:[%s486_s27] ss:$0 sm:$0xff]  ;;  %v667_v48 = vld [vmem:[%s1178_s0 + $0x8] sm:$0xff] (%p661_p6) }
  0x19   : > { %v621_v27 = vld [vmem:[#allocation2] sm:$0xff] }
  0x1a   : > { %912 = vmatmul.msk.bf16.vlgmr.msra.gmra.mxu0 %vm547_vm1, %v526_v5  ;;  %v666_v45 = vld [vmem:[%s1178_s0] sm:$0xff] (%p661_p6) }
  0x1b   : > { %610 = vmatpush.bf16.msra.mxu1 %v941_v11  ;;  %v979_v54 = vpop.eup (%p661_p6), %978 }
  0x1c   : > { %v679_v55 = vmul.f32 (%p661_p6), 32.0, %v979_v54  ;;  %vm683_vm5 = vweird.f32 (%p661_p6), %v979_v54 }
  0x1e   : > { %v680_v56 = vsub.f32 (%p661_p6), 1.0, %v679_v55 }
  0x1f   : > { %611 = vmatpush.bf16.msra.mxu1 %v940_v14 }
  0x20   : > { %631 = vperm.xlu0 %972, %v523_v17   ;;  %652 = vperm.xlu1 %973, %v523_v17   ;;  %v681_v57 = vmul.f32 (%p661_p6), %v979_v54, %v680_v56 }
  0x22   : > { %v682_v58 = vadd.f32 (%p661_p6), %v979_v54, %v681_v57 }
  0x24   : > { %v684_v59 = vsel (%p661_p6), %vm683_vm5, %v979_v54, %v682_v58 }
  0x8a   : > { %v627_v28 = vpop.permute.xlu0 %626  ;;  %v648_v35 = vpop.permute.xlu1 %647 }
  0x8b   : > { %v637_v29 = vmul.f32 %v975_v26, %v627_v28 }
  0x8d   : > { %v639_v30 = vadd.f32 %v637_v29, %v621_v27 }
  0x8f   : > { %641 = vst.msk [vmem:[#allocation2] sm:$0xff] %vm547_vm1, %v639_v30 }
  0x92   : > { %v632_v32 = vpop.permute.xlu0 %631  ;;  %v653_v40 = vpop.permute.xlu1 %652 }
  0x93   : > { %v638_v33 = vmul.f32 %v975_v26, %v632_v32 }
  0x95   : > { %v640_v34 = vadd.f32 %v638_v33, %v622_v31 }
  0x96   : > { %v643_v37 = vld [vmem:[#allocation2] sm:$0xff] }
  0x97   : > { %v560_v18 = vpop.f32.mrf.mxu0  ;;  %642 = vst.msk [vmem:[#allocation2 + $0x8] sm:$0xff] %vm547_vm1, %v640_v34 }
  0x98   : > { %v561_v20 = vadd.f32 %v974_v19, %v560_v18 }
  0x9a   : > { %v565_v23 = vmax.f32 %v561_v20, 0.0  ;;  %v976_v20 = vld [vmem:[%s1185_s7] ss:$0 sm:$0xff] (%p661_p6) }
  0x9e   : > { %v644_v43 = vld [vmem:[#allocation2 + $0x8] sm:$0xff] }
  0x9f   : > { %v562_v21 = vpop.f32.mrf.mxu0 }
  0xa0   : > { %v563_v22 = vadd.f32 %v974_v19, %v562_v21 }
  0xa2   : > { %v566_v24 = vmax.f32 %v563_v22, 0.0 }
  0xa4   : > { %v567_v25 = vpack.c.bf16 %v566_v24, %v565_v23  ;;  %v977_v23 = vld [vmem:[%s1186_s8] ss:$0 sm:$0xff] (%p661_p6) }
  0xa6   : > { %929 = vmatmul.msk.bf16.vlgmr.msra.gmra.mxu1 %vm600_vm4, %v567_v25 }
 0x123   : > { %v613_v36 = vpop.f32.mrf.mxu1 }
 0x124   : > { %v655_v38 = vmul.f32 %v648_v35, %v613_v36 }
 0x126   : > { %v657_v39 = vadd.f32 %v655_v38, %v643_v37 }
 0x128   : > { %659 = vst.msk [vmem:[#allocation2] sm:$0xff] %vm547_vm1, %v657_v39 }
 0x12b   : > { %v615_v41 = vpop.f32.mrf.mxu1 }
 0x12c   : > { %v656_v42 = vmul.f32 %v653_v40, %v615_v41  ;;  %665 = sbr.rel (!%p661_p6) target bundleno = 583 (0x247), region = 68 }
 0x12e   : > { %v658_v44 = vadd.f32 %v656_v42, %v644_v43 }
 0x12f   : > { %v668_v46 = vld [vmem:[#allocation2] sm:$0xff] (%p661_p6) }
 0x130   : > { %660 = vst.msk [vmem:[#allocation2 + $0x8] sm:$0xff] %vm547_vm1, %v658_v44  ;;  %v670_v47 = vadd.f32 (%p661_p6), %v668_v46, %v666_v45 }
 0x132   : > { %v672_v50 = vsel %vm547_vm1, %v670_v47, 0.0 }
 0x133   : > { %673 = vadd.xlane.f32.xlu0 %v672_v50 }
 0x137   : > { %v669_v49 = vld [vmem:[#allocation2 + $0x8] sm:$0xff] }
 0x138   : > { %v671_v51 = vadd.f32 %v669_v49, %v667_v48 }
 0x13a   : > { %v675_v52 = vsel %vm547_vm1, %v671_v51, 0.0 }
 0x13b   : > { %676 = vadd.xlane.f32.xlu0 %v675_v52 }
 0x1a6   : > { %v674_v60 = vpop.xlane.xlu0 %673 }
 0x1a7   : > { %v685_v61 = vmul.f32 %v684_v59, %v674_v60 }
 0x1a9   : > { %v687_v62 = vsub.f32 %v670_v47, %v685_v61 }
 0x1ab   : > { %v689_v63 = vmul.f32 %v687_v62, %v687_v62 }
 0x1ad   : > { %v691_v0 = vsel %vm547_vm1, %v689_v63, 0.0 }
 0x1ae   : > { %692 = vadd.xlane.f32.xlu1 %v691_v0  ;;  %v677_v1 = vpop.xlane.xlu0 %676 }
 0x1af   : > { %v686_v2 = vmul.f32 %v684_v59, %v677_v1 }
 0x1b1   : > { %v688_v3 = vsub.f32 %v671_v51, %v686_v2 }
 0x1b3   : > { %v690_v4 = vmul.f32 %v688_v3, %v688_v3 }
 0x1b5   : > { %v694_v5 = vsel %vm547_vm1, %v690_v4, 0.0 }
 0x1b6   : > { %695 = vadd.xlane.f32.xlu1 %v694_v5 }
 0x221   : > { %v693_v6 = vpop.xlane.xlu1 %692 }
 0x222   : > { %v697_v7 = vmul.f32 %v693_v6, %v684_v59 }
 0x224   : > { %v699_v8 = vadd.f32 1e-05, %v697_v7 }
 0x226   : > { %980 = vrsqrt.f32 %v699_v8  ;;  %vm707_vm7 = vweird.f32 %v699_v8 }
 0x229   : > { %v696_v9 = vpop.xlane.xlu1 %695 }
 0x22a   : > { %v698_v10 = vmul.f32 %v696_v9, %v684_v59 }
 0x22c   : > { %v981_v11 = vpop.eup %980  ;;  %v700_v12 = vadd.f32 1e-05, %v698_v10 }
 0x22d   : > { %v702_v13 = vmul.f32 %v981_v11, %v699_v8  ;;  %vm708_vm6 = vweird.f32 %v981_v11 }
 0x22e   : > { %982 = vrsqrt.f32 %v700_v12  ;;  %vm709_vm8 = vmor %vm707_vm7, %vm708_vm6  ;;  %vm717_vm10 = vweird.f32 %v700_v12 }
 0x22f   : > { %v703_v14 = vmul.f32 %v981_v11, %v702_v13 }
 0x231   : > { %v704_v15 = vmul.f32 0.5, %v703_v14 }
 0x233   : > { %v705_v16 = vsub.f32 1.5, %v704_v15 }
 0x234   : > { %v983_v17 = vpop.eup %982 }
 0x235   : > { %v706_v18 = vmul.f32 %v981_v11, %v705_v16  ;;  %v712_v19 = vmul.f32 %v983_v17, %v700_v12  ;;  %vm718_vm9 = vweird.f32 %v983_v17 }
 0x236   : > { %vm719_vm11 = vmor %vm717_vm10, %vm718_vm9 }
 0x237   : > { %v710_v21 = vsel %vm709_vm8, %v981_v11, %v706_v18  ;;  %v713_v22 = vmul.f32 %v983_v17, %v712_v19 }
 0x238   : > { %v721_v24 = vmul.f32 %v710_v21, %v687_v62 }
 0x239   : > { %v714_v25 = vmul.f32 0.5, %v713_v22 }
 0x23a   : > { %v727_v26 = vmul.f32 %v976_v20, %v721_v24 }
 0x23b   : > { %v715_v27 = vsub.f32 1.5, %v714_v25 }
 0x23c   : > { %v733_v28 = vadd.f32 %v977_v23, %v727_v26 }
 0x23d   : > { %v716_v29 = vmul.f32 %v983_v17, %v715_v27 }
 0x23e   : > { %735 = vst.msk [vmem:[%s1187_s9] sm:$0xff] %vm547_vm1, %v733_v28 }
 0x23f   : > { %v720_v30 = vsel %vm719_vm11, %v983_v17, %v716_v29 }
 0x240   : > { %v722_v31 = vmul.f32 %v720_v30, %v688_v3 }
 0x242   : > { %v728_v32 = vmul.f32 %v976_v20, %v722_v31 }
 0x244   : > { %v734_v33 = vadd.f32 %v977_v23, %v728_v32 }
 0x246   : > { %736 = vst.msk [vmem:[%s1187_s9 + $0x8] sm:$0xff] %vm547_vm1, %v734_v33 }
 0x247 PF: > { %s19_s11 = sadd.s32 1, %s1006_s11   ;;  %s1188_s30 = smov %s1002_s10 }
 0x248   : > { %p16_p7 = scmp.ge.s32.totalorder %s19_s11, 6   ;;  %s1189_s10 = smov %s1191_s12 }
 0x24a   :  { %18 = sbr.rel (!%p16_p7) target bundleno = 2 (0x2), region = 116 }

</bundles_post_ra>
